<compile_context>
chip_gen: v7x
topology: tpu7x:2x2x1
jax: 0.10.0
libtpu: 0.0.40
codegen_flags: <defaults>
</compile_context>

<pallas_src>
import jax
import jax.numpy as jnp
from jax import lax
from jax.experimental import pallas as pl
from jax.experimental.pallas import tpu as pltpu

C = 128        # conv channels (== TPU lane width)
K = 5          # conv kernel size ('same' padding -> pad 2 each side)
POOL = 8       # MaxPool1d kernel == stride
NCLS = 7       # output classes
NPAD = 8       # classes padded to a sublane-friendly 8


def _forward_kernel(v_ref, wbig_ref, b1_ref, w2_ref, b2_ref, wfc_ref, bfc_ref,
                    o_ref, hpad_ref):
    # v_ref   : (BT*Lp, 2*POOL)   stride-8 conv1 window matrix for this tile
    # wbig_ref: (2*POOL, POOL*C)  block-Toeplitz conv1 weight (j-major lanes)
    # b1_ref  : (1, C)            conv1 bias, lane-dense
    # w2_ref  : (K, C, C)         conv2 weight as (tap, c_in, c_out)
    # b2_ref  : (1, C)            conv2 bias, lane-dense
    # wfc_ref : (NPAD, Lp*C)      fc weight, lane-dense, flatten order p*C + c
    # bfc_ref : (1, NPAD)         fc bias, padded classes get -1e30
    # o_ref   : (BT, NPAD)        softmax probabilities (padded class -> 0)
    # hpad_ref: VMEM scratch (BT, Lp + 4, C) for conv2 'same' padding
    BT = o_ref.shape[0]
    M = v_ref.shape[0]                 # BT * Lp
    Lp = M // BT
    PAD = (K - 1) // 2

    # ---- conv1 (1->C, k=5, 'same') fused with MaxPool1d(8): MXU + lane max ---
    v = v_ref[...]                                                  # (M, 16)
    pooled = jnp.dot(v, wbig_ref[:, 0:C], preferred_element_type=jnp.float32)
    for j in range(1, POOL):
        yj = jnp.dot(v, wbig_ref[:, j * C:(j + 1) * C],
                     preferred_element_type=jnp.float32)
        pooled = jnp.maximum(pooled, yj)
    # per-channel bias and ReLU commute with the in-group max -> apply once.
    pooled = jnp.maximum(pooled + b1_ref[...], 0.0)                 # (M, C)
    # drop1: Dropout(0.1) is identity at inference.

    # ---- 'same' padding for conv2 via persistent VMEM scratch (no concat) ----
    zpad = jnp.zeros((BT, PAD, C), jnp.float32)
    hpad_ref[:, :PAD, :] = zpad
    hpad_ref[:, PAD + Lp:, :] = zpad
    hpad_ref[:, PAD:PAD + Lp, :] = pooled.reshape(BT, Lp, C)

    # ---- conv2 (C -> C, k=5, 'same') + bias + ReLU: 5 MXU matmuls ------------
    acc2 = jnp.broadcast_to(b2_ref[...], (M, C))
    for k in range(K):
        lhs = hpad_ref[:, k:k + Lp, :].reshape(M, C)                # (M, C_in)
        acc2 = acc2 + jnp.dot(lhs, w2_ref[k],
                              preferred_element_type=jnp.float32)
    h2 = jnp.maximum(acc2, 0.0)
    # drop2: identity at inference.

    # ---- Flatten + Linear (lane-dense weight, classes padded to 8) -----------
    flat = h2.reshape(BT, Lp * C)                   # flatten index = p*C + c
    logits = lax.dot_general(
        flat, wfc_ref[...],
        dimension_numbers=(((1,), (1,)), ((), ())),
        preferred_element_type=jnp.float32) + bfc_ref[...]          # (BT, NPAD)

    # ---- Softmax(dim=1); padded class has -1e30 bias -> probability 0 --------
    m = jnp.max(logits, axis=-1, keepdims=True)
    e = jnp.exp(logits - m)
    o_ref[...] = e / jnp.sum(e, axis=-1, keepdims=True)


def audio_classifier_forward(x, torch_params, *, bt=8):
    """x: (B, 1, L) float32 in PyTorch NCL layout.  Returns (B, 7) softmax probs.

    torch_params holds PyTorch-native shapes:
      conv1.weight (C,1,K), conv1.bias (C,), conv2.weight (C,C,K), conv2.bias (C,),
      fc1.weight (7, C*L/8), fc1.bias (7,).
    """
    w1, b1, w2, b2, wfc, bfc = torch_params
    B, cin, L = x.shape
    assert cin == 1 and L % POOL == 0, "expects 1 input channel and L % 8 == 0"
    assert bt % 8 == 0, "batch tile must be sublane-aligned"
    Lp = L // POOL
    pad = (K - 1) // 2
    Bp = pl.cdiv(B, bt) * bt

    # ---- conv1 window matrix: one row per (sample, pool group), 16 taps ------
    # V[b*Lp + p, i] = xpad[b, 8p + i] with xpad = x zero-padded (2 left, 6 right).
    # Taps i >= 12 only ever meet zero entries of Wbig, so the extra right pad
    # is inert; it just makes the windows a clean concat of two 8-groups.
    xpad = jnp.pad(x[:, 0, :].astype(jnp.float32),
                   ((0, Bp - B), (pad, POOL - pad)))                # (Bp, L + 8)
    g = xpad.reshape(Bp, Lp + 1, POOL)
    v = jnp.concatenate([g[:, :Lp, :], g[:, 1:, :]], axis=-1)       # (Bp, Lp, 16)
    v = v.reshape(Bp * Lp, 2 * POOL)

    # ---- block-Toeplitz conv1 weight: Wbig[j + k, j*C + c] = w1[c, 0, k] -----
    w1_kc = jnp.transpose(w1[:, 0, :]).astype(jnp.float32)          # (K, C)
    wbig = jnp.zeros((2 * POOL, POOL * C), jnp.float32)
    for j in range(POOL):
        wbig = wbig.at[j:j + K, j * C:(j + 1) * C].set(w1_kc)

    # ---- remaining parameter layout prep (cheap, outside the kernel) ---------
    b1_r = b1.reshape(1, C).astype(jnp.float32)
    w2_t = jnp.transpose(w2, (2, 1, 0)).astype(jnp.float32)         # (K, C_in, C_out)
    b2_r = b2.reshape(1, C).astype(jnp.float32)
    # torch flatten order is c*Lp + p; kernel flatten order is p*C + c -> permute,
    # then store lane-dense as (8, Lp*C) with a zero row for the padded class.
    wfc_td = wfc.reshape(NCLS, C, Lp).transpose(0, 2, 1).reshape(NCLS, Lp * C)
    wfc_td = jnp.pad(wfc_td, ((0, NPAD - NCLS), (0, 0))).astype(jnp.float32)
    bfc_p = jnp.pad(bfc.reshape(1, NCLS), ((0, 0), (0, NPAD - NCLS)),
                    constant_values=-1e30).astype(jnp.float32)

    out = pl.pallas_call(
        _forward_kernel,
        out_shape=jax.ShapeDtypeStruct((Bp, NPAD), jnp.float32),
        grid=(Bp // bt,),
        in_specs=[
            pl.BlockSpec((bt * Lp, 2 * POOL), lambda i: (i, 0)),    # conv1 windows
            pl.BlockSpec((2 * POOL, POOL * C), lambda i: (0, 0)),   # conv1 Toeplitz W
            pl.BlockSpec((1, C), lambda i: (0, 0)),                 # conv1 bias
            pl.BlockSpec((K, C, C), lambda i: (0, 0, 0)),           # conv2 weight
            pl.BlockSpec((1, C), lambda i: (0, 0)),                 # conv2 bias
            pl.BlockSpec((NPAD, Lp * C), lambda i: (0, 0)),         # fc weight
            pl.BlockSpec((1, NPAD), lambda i: (0, 0)),              # fc bias (padded)
        ],
        out_specs=pl.BlockSpec((bt, NPAD), lambda i: (i, 0)),
        scratch_shapes=[pltpu.VMEM((bt, Lp + 2 * pad, C), jnp.float32)],
        compiler_params=pltpu.CompilerParams(
            dimension_semantics=("parallel",),
            vmem_limit_bytes=48 * 1024 * 1024),
    )(v, wbig, b1_r, w2_t, b2_r, wfc_td, bfc_p)
    return out[:B, :NCLS]


def reference_forward(x, torch_params):
    """Plain-JAX reference with the same semantics as the PyTorch forward (eval)."""
    w1, b1, w2, b2, wfc, bfc = torch_params
    dn = ('NCH', 'OIH', 'NCH')
    pad = (K - 1) // 2
    y = lax.conv_general_dilated(x, w1, (1,), [(pad, pad)],
                                 dimension_numbers=dn) + b1.reshape(1, C, 1)
    y = jnp.maximum(y, 0.0)
    y = lax.reduce_window(y, -jnp.inf, lax.max, (1, 1, POOL), (1, 1, POOL), 'VALID')
    y = lax.conv_general_dilated(y, w2, (1,), [(pad, pad)],
                                 dimension_numbers=dn) + b2.reshape(1, C, 1)
    y = jnp.maximum(y, 0.0)
    flat = y.reshape(y.shape[0], -1)                 # torch Flatten order: c*Lp + t
    logits = flat @ wfc.T + bfc
    return jax.nn.softmax(logits, axis=1)


if __name__ == "__main__":
    B, L = 16, 128          # small stand-in for the real L=2376 (must be multiple of 8)
    Lp = L // POOL

    key = jax.random.PRNGKey(0)
    k1, k2, k3, k4, k5, k6, kx = jax.random.split(key, 7)

    # Deterministic synthetic parameters, PyTorch-native shapes.
    w1 = jax.random.normal(k1, (C, 1, K), jnp.float32) * 0.2                    # conv1.weight
    b1 = jax.random.normal(k2, (C,), jnp.float32) * 0.1                         # conv1.bias
    w2 = jax.random.normal(k3, (C, C, K), jnp.float32) / jnp.sqrt(C * K)        # conv2.weight
    b2 = jax.random.normal(k4, (C,), jnp.float32) * 0.1                         # conv2.bias
    wfc = jax.random.normal(k5, (NCLS, C * Lp), jnp.float32) / jnp.sqrt(C * Lp) # fc1.weight
    bfc = jax.random.normal(k6, (NCLS,), jnp.float32) * 0.1                     # fc1.bias
    params = (w1, b1, w2, b2, wfc, bfc)

    x = jax.random.normal(kx, (B, 1, L), jnp.float32)

    out = jax.block_until_ready(audio_classifier_forward(x, params))
    ref = jax.block_until_ready(reference_forward(x, params))

    assert out.shape == (B, NCLS)
    assert bool(jnp.all(jnp.isfinite(out)))
    assert bool(jnp.allclose(jnp.sum(out, axis=1), 1.0, atol=1e-5))
    assert bool(jnp.allclose(out, ref, rtol=1e-3, atol=1e-3))

    print("KERNEL_OK")
</pallas_src>

<mosaic_0001>
module attributes {stable_mosaic.version = 11 : i64} {
  func.func @_forward_kernel(%arg0: i32, %arg1: memref<128x16xf32, #tpu.memory_space<vmem>>, %arg2: memref<16x1024xf32, #tpu.memory_space<vmem>>, %arg3: memref<1x128xf32, #tpu.memory_space<vmem>>, %arg4: memref<5x128x128xf32, #tpu.memory_space<vmem>>, %arg5: memref<1x128xf32, #tpu.memory_space<vmem>>, %arg6: memref<8x2048xf32, #tpu.memory_space<vmem>>, %arg7: memref<1x8xf32, #tpu.memory_space<vmem>>, %arg8: memref<8x8xf32, #tpu.memory_space<vmem>>, %arg9: memref<8x20x128xf32, #tpu.memory_space<vmem>>) attributes {dimension_semantics = [#tpu.dimension_semantics<parallel>], iteration_bounds = array<i64: 2>, scalar_prefetch = 0 : i64, scratch_operands = 1 : i64, tpu.core_type = #tpu.core_type<tc>, window_params = [{transform_indices = @transform_0, window_bounds = array<i64: 128, 16>}, {pipeline_mode = #tpu.pipeline_mode<synchronous>, transform_indices = @transform_1, window_bounds = array<i64: 16, 1024>}, {pipeline_mode = #tpu.pipeline_mode<synchronous>, transform_indices = @transform_2, window_bounds = array<i64: 1, 128>}, {pipeline_mode = #tpu.pipeline_mode<synchronous>, transform_indices = @transform_3, window_bounds = array<i64: 5, 128, 128>}, {pipeline_mode = #tpu.pipeline_mode<synchronous>, transform_indices = @transform_4, window_bounds = array<i64: 1, 128>}, {pipeline_mode = #tpu.pipeline_mode<synchronous>, transform_indices = @transform_5, window_bounds = array<i64: 8, 2048>}, {pipeline_mode = #tpu.pipeline_mode<synchronous>, transform_indices = @transform_6, window_bounds = array<i64: 1, 8>}, {transform_indices = @transform_7, window_bounds = array<i64: 8, 8>}]} {
    %c0 = arith.constant 0 : index
    %c0_0 = arith.constant 0 : index
    %0 = vector.load %arg1[%c0, %c0_0] : memref<128x16xf32, #tpu.memory_space<vmem>>, vector<128x16xf32>
    %c0_1 = arith.constant 0 : index
    %c0_2 = arith.constant 0 : index
    %1 = vector.load %arg2[%c0_1, %c0_2] : memref<16x1024xf32, #tpu.memory_space<vmem>>, vector<16x128xf32>
    %cst = arith.constant dense<0.000000e+00> : vector<128x128xf32>
    %2 = tpu.matmul %0, %1, %cst {dimension_numbers = #tpu.dot_dimension_numbers<[1], [0], [0], [1], [0, 0, 1, 1], [], []>} : vector<128x16xf32>, vector<16x128xf32>, vector<128x128xf32> -> vector<128x128xf32>
    %c0_3 = arith.constant 0 : index
    %c128 = arith.constant 128 : index
    %3 = vector.load %arg2[%c0_3, %c128] : memref<16x1024xf32, #tpu.memory_space<vmem>>, vector<16x128xf32>
    %cst_4 = arith.constant dense<0.000000e+00> : vector<128x128xf32>
    %4 = tpu.matmul %0, %3, %cst_4 {dimension_numbers = #tpu.dot_dimension_numbers<[1], [0], [0], [1], [0, 0, 1, 1], [], []>} : vector<128x16xf32>, vector<16x128xf32>, vector<128x128xf32> -> vector<128x128xf32>
    %5 = arith.maximumf %2, %4 : vector<128x128xf32>
    %c0_5 = arith.constant 0 : index
    %c256 = arith.constant 256 : index
    %6 = vector.load %arg2[%c0_5, %c256] : memref<16x1024xf32, #tpu.memory_space<vmem>>, vector<16x128xf32>
    %cst_6 = arith.constant dense<0.000000e+00> : vector<128x128xf32>
    %7 = tpu.matmul %0, %6, %cst_6 {dimension_numbers = #tpu.dot_dimension_numbers<[1], [0], [0], [1], [0, 0, 1, 1], [], []>} : vector<128x16xf32>, vector<16x128xf32>, vector<128x128xf32> -> vector<128x128xf32>
    %8 = arith.maximumf %5, %7 : vector<128x128xf32>
    %c0_7 = arith.constant 0 : index
    %c384 = arith.constant 384 : index
    %9 = vector.load %arg2[%c0_7, %c384] : memref<16x1024xf32, #tpu.memory_space<vmem>>, vector<16x128xf32>
    %cst_8 = arith.constant dense<0.000000e+00> : vector<128x128xf32>
    %10 = tpu.matmul %0, %9, %cst_8 {dimension_numbers = #tpu.dot_dimension_numbers<[1], [0], [0], [1], [0, 0, 1, 1], [], []>} : vector<128x16xf32>, vector<16x128xf32>, vector<128x128xf32> -> vector<128x128xf32>
    %11 = arith.maximumf %8, %10 : vector<128x128xf32>
    %c0_9 = arith.constant 0 : index
    %c512 = arith.constant 512 : index
    %12 = vector.load %arg2[%c0_9, %c512] : memref<16x1024xf32, #tpu.memory_space<vmem>>, vector<16x128xf32>
    %cst_10 = arith.constant dense<0.000000e+00> : vector<128x128xf32>
    %13 = tpu.matmul %0, %12, %cst_10 {dimension_numbers = #tpu.dot_dimension_numbers<[1], [0], [0], [1], [0, 0, 1, 1], [], []>} : vector<128x16xf32>, vector<16x128xf32>, vector<128x128xf32> -> vector<128x128xf32>
    %14 = arith.maximumf %11, %13 : vector<128x128xf32>
    %c0_11 = arith.constant 0 : index
    %c640 = arith.constant 640 : index
    %15 = vector.load %arg2[%c0_11, %c640] : memref<16x1024xf32, #tpu.memory_space<vmem>>, vector<16x128xf32>
    %cst_12 = arith.constant dense<0.000000e+00> : vector<128x128xf32>
    %16 = tpu.matmul %0, %15, %cst_12 {dimension_numbers = #tpu.dot_dimension_numbers<[1], [0], [0], [1], [0, 0, 1, 1], [], []>} : vector<128x16xf32>, vector<16x128xf32>, vector<128x128xf32> -> vector<128x128xf32>
    %17 = arith.maximumf %14, %16 : vector<128x128xf32>
    %c0_13 = arith.constant 0 : index
    %c768 = arith.constant 768 : index
    %18 = vector.load %arg2[%c0_13, %c768] : memref<16x1024xf32, #tpu.memory_space<vmem>>, vector<16x128xf32>
    %cst_14 = arith.constant dense<0.000000e+00> : vector<128x128xf32>
    %19 = tpu.matmul %0, %18, %cst_14 {dimension_numbers = #tpu.dot_dimension_numbers<[1], [0], [0], [1], [0, 0, 1, 1], [], []>} : vector<128x16xf32>, vector<16x128xf32>, vector<128x128xf32> -> vector<128x128xf32>
    %20 = arith.maximumf %17, %19 : vector<128x128xf32>
    %c0_15 = arith.constant 0 : index
    %c896 = arith.constant 896 : index
    %21 = vector.load %arg2[%c0_15, %c896] : memref<16x1024xf32, #tpu.memory_space<vmem>>, vector<16x128xf32>
    %cst_16 = arith.constant dense<0.000000e+00> : vector<128x128xf32>
    %22 = tpu.matmul %0, %21, %cst_16 {dimension_numbers = #tpu.dot_dimension_numbers<[1], [0], [0], [1], [0, 0, 1, 1], [], []>} : vector<128x16xf32>, vector<16x128xf32>, vector<128x128xf32> -> vector<128x128xf32>
    %23 = arith.maximumf %20, %22 : vector<128x128xf32>
    %c0_17 = arith.constant 0 : index
    %c0_18 = arith.constant 0 : index
    %24 = vector.load %arg3[%c0_17, %c0_18] : memref<1x128xf32, #tpu.memory_space<vmem>>, vector<1x128xf32>
    %25 = vector.broadcast %24 : vector<1x128xf32> to vector<128x128xf32>
    %26 = arith.addf %23, %25 : vector<128x128xf32>
    %cst_19 = arith.constant 0.000000e+00 : f32
    %27 = vector.broadcast %cst_19 : f32 to vector<128x128xf32>
    %28 = arith.maximumf %26, %27 : vector<128x128xf32>
    %cst_20 = arith.constant 0.000000e+00 : f32
    %29 = vector.broadcast %cst_20 : f32 to vector<8x2x128xf32>
    %c0_21 = arith.constant 0 : index
    %c0_22 = arith.constant 0 : index
    %c0_23 = arith.constant 0 : index
    %30 = vector.load %arg9[%c0_21, %c0_22, %c0_23] : memref<8x20x128xf32, #tpu.memory_space<vmem>>, vector<8x2x128xf32>
    tpu.vector_store %arg9[%c0_21, %c0_22, %c0_23], %29 {strides = array<i32>} : memref<8x20x128xf32, #tpu.memory_space<vmem>>, vector<8x2x128xf32>,
    %c0_24 = arith.constant 0 : index
    %c18 = arith.constant 18 : index
    %c0_25 = arith.constant 0 : index
    %31 = vector.load %arg9[%c0_24, %c18, %c0_25] : memref<8x20x128xf32, #tpu.memory_space<vmem>>, vector<8x2x128xf32>
    tpu.vector_store %arg9[%c0_24, %c18, %c0_25], %29 {strides = array<i32>} : memref<8x20x128xf32, #tpu.memory_space<vmem>>, vector<8x2x128xf32>,
    %32 = vector.shape_cast %28 : vector<128x128xf32> to vector<8x16x128xf32>
    %c0_26 = arith.constant 0 : index
    %c2 = arith.constant 2 : index
    %c0_27 = arith.constant 0 : index
    %33 = vector.load %arg9[%c0_26, %c2, %c0_27] : memref<8x20x128xf32, #tpu.memory_space<vmem>>, vector<8x16x128xf32>
    tpu.vector_store %arg9[%c0_26, %c2, %c0_27], %32 {strides = array<i32>} : memref<8x20x128xf32, #tpu.memory_space<vmem>>, vector<8x16x128xf32>,
    %c0_28 = arith.constant 0 : index
    %c0_29 = arith.constant 0 : index
    %34 = vector.load %arg5[%c0_28, %c0_29] : memref<1x128xf32, #tpu.memory_space<vmem>>, vector<1x128xf32>
    %35 = vector.shape_cast %34 : vector<1x128xf32> to vector<1x128xf32>
    %36 = vector.broadcast %35 : vector<1x128xf32> to vector<128x128xf32>
    %c0_30 = arith.constant 0 : index
    %c0_31 = arith.constant 0 : index
    %c0_32 = arith.constant 0 : index
    %37 = vector.load %arg9[%c0_30, %c0_31, %c0_32] : memref<8x20x128xf32, #tpu.memory_space<vmem>>, vector<8x16x128xf32>
    %38 = vector.shape_cast %37 : vector<8x16x128xf32> to vector<128x128xf32>
    %c0_33 = arith.constant 0 : index
    %c0_34 = arith.constant 0 : index
    %c0_35 = arith.constant 0 : index
    %39 = vector.load %arg4[%c0_33, %c0_34, %c0_35] : memref<5x128x128xf32, #tpu.memory_space<vmem>>, vector<1x128x128xf32>
    %40 = vector.shape_cast %39 : vector<1x128x128xf32> to vector<128x128xf32>
    %cst_36 = arith.constant dense<0.000000e+00> : vector<128x128xf32>
    %41 = tpu.matmul %38, %40, %cst_36 {dimension_numbers = #tpu.dot_dimension_numbers<[1], [0], [0], [1], [0, 0, 1, 1], [], []>} : vector<128x128xf32>, vector<128x128xf32>, vector<128x128xf32> -> vector<128x128xf32>
    %42 = arith.addf %36, %41 : vector<128x128xf32>
    %c0_37 = arith.constant 0 : index
    %c1 = arith.constant 1 : index
    %c0_38 = arith.constant 0 : index
    %43 = vector.load %arg9[%c0_37, %c1, %c0_38] : memref<8x20x128xf32, #tpu.memory_space<vmem>>, vector<8x16x128xf32>
    %44 = vector.shape_cast %43 : vector<8x16x128xf32> to vector<128x128xf32>
    %c1_39 = arith.constant 1 : index
    %c0_40 = arith.constant 0 : index
    %c0_41 = arith.constant 0 : index
    %45 = vector.load %arg4[%c1_39, %c0_40, %c0_41] : memref<5x128x128xf32, #tpu.memory_space<vmem>>, vector<1x128x128xf32>
    %46 = vector.shape_cast %45 : vector<1x128x128xf32> to vector<128x128xf32>
    %cst_42 = arith.constant dense<0.000000e+00> : vector<128x128xf32>
    %47 = tpu.matmul %44, %46, %cst_42 {dimension_numbers = #tpu.dot_dimension_numbers<[1], [0], [0], [1], [0, 0, 1, 1], [], []>} : vector<128x128xf32>, vector<128x128xf32>, vector<128x128xf32> -> vector<128x128xf32>
    %48 = arith.addf %42, %47 : vector<128x128xf32>
    %c0_43 = arith.constant 0 : index
    %c2_44 = arith.constant 2 : index
    %c0_45 = arith.constant 0 : index
    %49 = vector.load %arg9[%c0_43, %c2_44, %c0_45] : memref<8x20x128xf32, #tpu.memory_space<vmem>>, vector<8x16x128xf32>
    %50 = vector.shape_cast %49 : vector<8x16x128xf32> to vector<128x128xf32>
    %c2_46 = arith.constant 2 : index
    %c0_47 = arith.constant 0 : index
    %c0_48 = arith.constant 0 : index
    %51 = vector.load %arg4[%c2_46, %c0_47, %c0_48] : memref<5x128x128xf32, #tpu.memory_space<vmem>>, vector<1x128x128xf32>
    %52 = vector.shape_cast %51 : vector<1x128x128xf32> to vector<128x128xf32>
    %cst_49 = arith.constant dense<0.000000e+00> : vector<128x128xf32>
    %53 = tpu.matmul %50, %52, %cst_49 {dimension_numbers = #tpu.dot_dimension_numbers<[1], [0], [0], [1], [0, 0, 1, 1], [], []>} : vector<128x128xf32>, vector<128x128xf32>, vector<128x128xf32> -> vector<128x128xf32>
    %54 = arith.addf %48, %53 : vector<128x128xf32>
    %c0_50 = arith.constant 0 : index
    %c3 = arith.constant 3 : index
    %c0_51 = arith.constant 0 : index
    %55 = vector.load %arg9[%c0_50, %c3, %c0_51] : memref<8x20x128xf32, #tpu.memory_space<vmem>>, vector<8x16x128xf32>
    %56 = vector.shape_cast %55 : vector<8x16x128xf32> to vector<128x128xf32>
    %c3_52 = arith.constant 3 : index
    %c0_53 = arith.constant 0 : index
    %c0_54 = arith.constant 0 : index
    %57 = vector.load %arg4[%c3_52, %c0_53, %c0_54] : memref<5x128x128xf32, #tpu.memory_space<vmem>>, vector<1x128x128xf32>
    %58 = vector.shape_cast %57 : vector<1x128x128xf32> to vector<128x128xf32>
    %cst_55 = arith.constant dense<0.000000e+00> : vector<128x128xf32>
    %59 = tpu.matmul %56, %58, %cst_55 {dimension_numbers = #tpu.dot_dimension_numbers<[1], [0], [0], [1], [0, 0, 1, 1], [], []>} : vector<128x128xf32>, vector<128x128xf32>, vector<128x128xf32> -> vector<128x128xf32>
    %60 = arith.addf %54, %59 : vector<128x128xf32>
    %c0_56 = arith.constant 0 : index
    %c4 = arith.constant 4 : index
    %c0_57 = arith.constant 0 : index
    %61 = vector.load %arg9[%c0_56, %c4, %c0_57] : memref<8x20x128xf32, #tpu.memory_space<vmem>>, vector<8x16x128xf32>
    %62 = vector.shape_cast %61 : vector<8x16x128xf32> to vector<128x128xf32>
    %c4_58 = arith.constant 4 : index
    %c0_59 = arith.constant 0 : index
    %c0_60 = arith.constant 0 : index
    %63 = vector.load %arg4[%c4_58, %c0_59, %c0_60] : memref<5x128x128xf32, #tpu.memory_space<vmem>>, vector<1x128x128xf32>
    %64 = vector.shape_cast %63 : vector<1x128x128xf32> to vector<128x128xf32>
    %cst_61 = arith.constant dense<0.000000e+00> : vector<128x128xf32>
    %65 = tpu.matmul %62, %64, %cst_61 {dimension_numbers = #tpu.dot_dimension_numbers<[1], [0], [0], [1], [0, 0, 1, 1], [], []>} : vector<128x128xf32>, vector<128x128xf32>, vector<128x128xf32> -> vector<128x128xf32>
    %66 = arith.addf %60, %65 : vector<128x128xf32>
    %cst_62 = arith.constant 0.000000e+00 : f32
    %67 = vector.broadcast %cst_62 : f32 to vector<128x128xf32>
    %68 = arith.maximumf %66, %67 : vector<128x128xf32>
    %69 = vector.shape_cast %68 : vector<128x128xf32> to vector<8x2048xf32>
    %c0_63 = arith.constant 0 : index
    %c0_64 = arith.constant 0 : index
    %70 = vector.load %arg6[%c0_63, %c0_64] : memref<8x2048xf32, #tpu.memory_space<vmem>>, vector<8x2048xf32>
    %cst_65 = arith.constant dense<0.000000e+00> : vector<8x8xf32>
    %71 = tpu.matmul %69, %70, %cst_65 {dimension_numbers = #tpu.dot_dimension_numbers<[1], [1], [0], [0], [0, 0, 1, 0], [], []>} : vector<8x2048xf32>, vector<8x2048xf32>, vector<8x8xf32> -> vector<8x8xf32>
    %c0_66 = arith.constant 0 : index
    %c0_67 = arith.constant 0 : index
    %72 = vector.load %arg7[%c0_66, %c0_67] : memref<1x8xf32, #tpu.memory_space<vmem>>, vector<1x8xf32>
    %73 = vector.broadcast %72 : vector<1x8xf32> to vector<8x8xf32>
    %74 = arith.addf %71, %73 : vector<8x8xf32>
    %cst_68 = arith.constant dense<0xFF800000> : vector<8xf32>
    %75 = vector.multi_reduction <maximumf>, %74, %cst_68 [1] : vector<8x8xf32> to vector<8xf32>
    %76 = vector.shape_cast %75 : vector<8xf32> to vector<8x1xf32>
    %77 = vector.broadcast %76 : vector<8x1xf32> to vector<8x8xf32>
    %78 = arith.subf %74, %77 : vector<8x8xf32>
    %79 = math.exp %78 : vector<8x8xf32>
    %cst_69 = arith.constant dense<0.000000e+00> : vector<8xf32>
    %80 = vector.multi_reduction <add>, %79, %cst_69 [1] : vector<8x8xf32> to vector<8xf32>
    %81 = vector.shape_cast %80 : vector<8xf32> to vector<8x1xf32>
    %82 = vector.broadcast %81 : vector<8x1xf32> to vector<8x8xf32>
    %83 = arith.divf %79, %82 : vector<8x8xf32>
    %c0_70 = arith.constant 0 : index
    %c0_71 = arith.constant 0 : index
    %84 = vector.load %arg8[%c0_70, %c0_71] : memref<8x8xf32, #tpu.memory_space<vmem>>, vector<8x8xf32>
    tpu.vector_store %arg8[%c0_70, %c0_71], %83 {strides = array<i32>} : memref<8x8xf32, #tpu.memory_space<vmem>>, vector<8x8xf32>,
    return
  }
  func.func @transform_0(%arg0: i32) -> (i32, i32) {
    %c0_i32 = arith.constant 0 : i32
    %c0_i32_0 = arith.constant 0 : i32
    return %arg0, %c0_i32 : i32, i32
  }
  func.func @transform_1(%arg0: i32) -> (i32, i32) {
    %c0_i32 = arith.constant 0 : i32
    %c0_i32_0 = arith.constant 0 : i32
    %c0_i32_1 = arith.constant 0 : i32
    return %c0_i32, %c0_i32_0 : i32, i32
  }
  func.func @transform_2(%arg0: i32) -> (i32, i32) {
    %c0_i32 = arith.constant 0 : i32
    %c0_i32_0 = arith.constant 0 : i32
    %c0_i32_1 = arith.constant 0 : i32
    return %c0_i32, %c0_i32_0 : i32, i32
  }
  func.func @transform_3(%arg0: i32) -> (i32, i32, i32) {
    %c0_i32 = arith.constant 0 : i32
    %c0_i32_0 = arith.constant 0 : i32
    %c0_i32_1 = arith.constant 0 : i32
    %c0_i32_2 = arith.constant 0 : i32
    return %c0_i32, %c0_i32_0, %c0_i32_1 : i32, i32, i32
  }
  func.func @transform_4(%arg0: i32) -> (i32, i32) {
    %c0_i32 = arith.constant 0 : i32
    %c0_i32_0 = arith.constant 0 : i32
    %c0_i32_1 = arith.constant 0 : i32
    return %c0_i32, %c0_i32_0 : i32, i32
  }
  func.func @transform_5(%arg0: i32) -> (i32, i32) {
    %c0_i32 = arith.constant 0 : i32
    %c0_i32_0 = arith.constant 0 : i32
    %c0_i32_1 = arith.constant 0 : i32
    return %c0_i32, %c0_i32_0 : i32, i32
  }
  func.func @transform_6(%arg0: i32) -> (i32, i32) {
    %c0_i32 = arith.constant 0 : i32
    %c0_i32_0 = arith.constant 0 : i32
    %c0_i32_1 = arith.constant 0 : i32
    return %c0_i32, %c0_i32_0 : i32, i32
  }
  func.func @transform_7(%arg0: i32) -> (i32, i32) {
    %c0_i32 = arith.constant 0 : i32
    %c0_i32_0 = arith.constant 0 : i32
    return %arg0, %c0_i32 : i32, i32
  }
}

</mosaic_0001>

<bundles_post_ra>
// kernel: tpu_custom_call.1
= control target key start
LH: loop header
LB: loop body
LE: loop exit
PB: predicated region body
PF: predicated region fallthrough
CT: control target
= control target key end

     0   :  { %12 = vsyncpa [#allocation4], 0  ;;  %s5025_s24 = smov 0   ;;  %s5912_s0 = inlined_call_operand.vmem [shape: f32[256,16], index: 0, kind: input, shape index: {}]   ;;  %s5913_s1 = inlined_call_operand.vmem [shape: f32[16,1024], index: 1, kind: input, shape index: {}]   ;;  %s5914_s2 = inlined_call_operand.vmem [shape: f32[1,128], index: 2, kind: input, shape index: {}]   ;;  %s5915_s3 = inlined_call_operand.hbm [shape: f32[5,128,128], index: 3, kind: input, shape index: {}]   ;;  %s5916_s4 = inlined_call_operand.vmem [shape: f32[1,128], index: 4, kind: input, shape index: {}]   ;;  %s5917_s5 = inlined_call_operand.vmem [shape: f32[8,2048], index: 5, kind: input, shape index: {}]   ;;  %s5918_s6 = inlined_call_operand.vmem [shape: f32[1,8], index: 6, kind: input, shape index: {}]   ;;  %s5919_s7 = inlined_call_operand.vmem [shape: f32[16,8], index: 7, kind: output, shape index: {}]  }
   0x1 LB: > { %s5031_s25 = sadd.s32 4294967295, %s4978_s24   ;;  %p3677_p0 = scmp.ge.s32.totalorder %s4978_s24, 1  ;;  %s4978_s24 = sphi %s5025_s24, %s18_s24  }
   0x2   : > { %p201_p1 = scmp.lt.s32.totalorder %s4978_s24, 3  ;;  %s4980_s26 = smov [#allocation3]  }
   0x3   : > { %s219_s27 = sshll.u32 %s4980_s26, 4  ;;  %p5920_p3 = scmp.eq.s32.totalorder %s5031_s25, 0  ;;  %s220_s27 = int_to_ptr.vmem [resolvable:$true] %s219_s27 }
   0x4   : > { %p5035_p2 = pnand %p3677_p0, %p201_p1  ;;  %s4940_s9 = scalar_lea.hbm %s5915_s3, 10240 }
   0x5   : > { %p4941_p6 = scmp.ne.s32.totalorder %s5915_s3, %s4940_s9  ;;  %p4947_p10 = scmp.lt.u32.totalorder %s4940_s9, %s5915_s3 }
   0x6   : > { %s5923_s28 = scalar_select %p5035_p2, 1, 0 }
   0x7   : > { %p4917_p4 = pneg %p5035_p2 }
   0x9   : > { %p5044_p5 = pnand %p5920_p3, %p4917_p4 }
   0xb   : > { %p4942_p7 = pneg %p5044_p5 }
   0xd   : > { %p4943_p8 = pnand %p4942_p7, %p4941_p6 }
   0xf   : > { %p4944_p9 = pneg %p4943_p8 }
  0x11   : > { %p4949_p11 = pnand %p4947_p10, %p4944_p9 }
  0x13   : > { %4952 = shalt.err (!%p4949_p11)
}
  0x14   : > { %s4953_s14 = scalar_lea.vmem %s220_s27, 10240  ;;  %p4961_p1 = scmp.lt.s32.totalorder %s220_s27, %s220_s27 }
  0x15   : > { %p4954_p12 = scmp.ne.s32.totalorder %s220_s27, %s4953_s14  ;;  %p4962_p4 = scmp.lt.s32.totalorder %s4953_s14, %s4953_s14 }
  0x17   : > { %p4956_p13 = pnand %p4954_p12, %p4942_p7  ;;  %p4963_p3 = por %p4962_p4, %p4961_p1 }
  0x19   : > { %p4957_p0 = pneg %p4956_p13 }
  0x1b   : > { %p4964_p2 = pnand %p4963_p3, %p4957_p0 }
  0x1d   : > { %4967 = shalt.err (!%p4964_p2)
}
  0x1e   : > { %s4981_s15 = smov 128   ;;  %s4982_s16 = smov 8  }
  0x1f   : > { %4920 = dma.hbm_to_vmem [thread:$0]  (!%p5044_p5), %s5915_s3, 10240, %s220_s27, [#allocation4], %s4981_s15, %s4981_s15, %s4982_s16  }
  0x20   : > { %p5925_p6 = scmp.ne.s32.totalorder %s5923_s28, 0 }
  0x22   : > { %253 = sbr.rel (%p5925_p6) target bundleno = 1409 (0x581), region = 48 }
  0x29   : > { %p5926_p8 = scmp.eq.s32.totalorder %s5031_s25, 0 }
  0x2b   : > { %4973 = dma.done.wait (%p5926_p8), [#allocation4], 10240   ;;  %p5927_p7 = pmov %p5926_p8 }
  0x2c   : > { %s3682_s19 = sshll.u32 %s5031_s25, 4  ;;  %vm312_vm0 = vcmask 130048   ;;  %v310_v0 = vld [vmem:[%s5913_s1] sm:$0xff]  ;;  %v506_v4 = vld [vmem:[%s5913_s1 + $0x8] sm:$0xff]  ;;  %v669_v9 = vld [vmem:[%s5913_s1 + $0x10] sm:$0xff]  ;;  %vm3597_vm1 = vcmask 64512  }
  0x2d   : > { %4975 = vsyncadd (%p5927_p7), [#allocation4], 4294957056  ;;  %p285_p2 = scmp.lt.s32.totalorder %s3682_s19, 31  ;;  %v311_v1 = vld [vmem:[%s5913_s1 + $0x40] sm:$0xff]  ;;  %v507_v5 = vld [vmem:[%s5913_s1 + $0x48] sm:$0xff]  ;;  %p290_p3 = scmp.lt.s32.totalorder %s5031_s25, 1 }
  0x2e   : > { %v4626_v3 = vpack.c.bf16 %v311_v1, %v310_v0  ;;  %v4630_v6 = vpack.c.bf16 %v507_v5, %v506_v4  ;;  %v670_v10 = vld [vmem:[%s5913_s1 + $0x50] sm:$0xff]  ;;  %v995_v13 = vld [vmem:[%s5913_s1 + $0x20] sm:$0xff]  ;;  %v832_v31 = vld [vmem:[%s5913_s1 + $0x18] sm:$0xff] }
  0x2f   : > { %s5943_s19 = smov (!%p285_p2, %s3682_s19), 31  ;;  %v4634_v12 = vpack.c.bf16 %v670_v10, %v669_v9  ;;  %v996_v14 = vld [vmem:[%s5913_s1 + $0x60] sm:$0xff]  ;;  %v1321_v17 = vld [vmem:[%s5913_s1 + $0x30] sm:$0xff]  ;;  %v833_v32 = vld [vmem:[%s5913_s1 + $0x58] sm:$0xff]  ;;  %s5945_s25 = smov (!%p290_p3, %s5031_s25), 1 }
  0x30   : > { %s3683_s20 = sshll.u32 %s5943_s19, 3  ;;  %4627 = vmatprep.subr.bf16.mxu1 %v4626_v3  ;;  %v4642_v16 = vpack.c.bf16 %v996_v14, %v995_v13  ;;  %v1322_v18 = vld [vmem:[%s5913_s1 + $0x70] sm:$0xff]  ;;  %v4638_v33 = vpack.c.bf16 %v833_v32, %v832_v31  ;;  %v1158_v34 = vld [vmem:[%s5913_s1 + $0x28] sm:$0xff]  ;;  %v1484_v37 = vld [vmem:[%s5913_s1 + $0x38] sm:$0xff]  ;;  %s3684_s10 = sshll.u32 %s5945_s25, 3 }
  0x31   : > { %s5074_s23 = scalar_lea.vmem %s5912_s0, %s3683_s20  ;;  %4629 = vmatpush3.bf16.msra.mxu1 %v4626_v3  ;;  %v4650_v19 = vpack.c.bf16 %v1322_v18, %v1321_v17  ;;  %v1159_v35 = vld [vmem:[%s5913_s1 + $0x68] sm:$0xff]  ;;  %v1485_v38 = vld [vmem:[%s5913_s1 + $0x78] sm:$0xff]  ;;  %v1741_v52 = vld [vmem:[#allocation3] sm:$0xff]  ;;  %s293_s13 = scalar_lea.vmem %s5919_s7, %s3684_s10 }
  0x32   : > { %v5083_v2 = vld [vmem:[%s5074_s23] sm:$0xff]  ;;  %v5096_v7 = vld [vmem:[%s5074_s23 + $0x8] sm:$0xff]  ;;  %4631 = vmatprep.subr.bf16.mxu1 %v4630_v6  ;;  %v5099_v8 = vld [vmem:[%s5074_s23 + $0x10] sm:$0xff]  ;;  %4643 = vmatprep.subr.bf16.mxu0 %v4642_v16  ;;  %v4646_v36 = vpack.c.bf16 %v1159_v35, %v1158_v34  ;;  %v4654_v39 = vpack.c.bf16 %v1485_v38, %v1484_v37  ;;  %v4983_v37 = vmov 0.0  }
  0x33   : > { %4126 = vmatprep.mubr.msk.f32.mxu1 %vm312_vm0, %v5083_v2  ;;  %4238 = vmatprep.mubr.msk.f32.mxu0 %vm312_vm0, %v5083_v2  ;;  %v5112_v11 = vld [vmem:[%s5074_s23 + $0x18] sm:$0xff]  ;;  %v5121_v15 = vld [vmem:[%s5074_s23 + $0x20] sm:$0xff]  ;;  %v5134_v20 = vld [vmem:[%s5074_s23 + $0x28] sm:$0xff]  ;;  %1686 = vst [vmem:[#allocation2] sm:$0x3] %v4983_v37 }
  0x34   : > { %4127 = vmatmul.mubr.msk.f32.vlgmr.msra.gmra.mrb[0].mxu1 %vm312_vm0, %v5096_v7  ;;  %4645 = vmatpush3.bf16.msra.mxu0 %v4642_v16  ;;  %v5137_v21 = vld [vmem:[%s5074_s23 + $0x30] sm:$0xff]  ;;  %v5146_v22 = vld [vmem:[%s5074_s23 + $0x38] sm:$0xff]  ;;  %v5151_v23 = vld [vmem:[%s5074_s23 + $0x40] sm:$0xff]  ;;  %1687 = vst [vmem:[#allocation2 + $0x18] sm:$0x3] %v4983_v37 }
  0x35   : > { %4633 = vmatpush3.bf16.msra.mxu1 %v4630_v6  ;;  %4129 = vmatprep.mubr.msk.f32.mxu1 %vm312_vm0, %v5099_v8  ;;  %v5160_v24 = vld [vmem:[%s5074_s23 + $0x48] sm:$0xff]  ;;  %v5165_v25 = vld [vmem:[%s5074_s23 + $0x50] sm:$0xff]  ;;  %v5174_v26 = vld [vmem:[%s5074_s23 + $0x58] sm:$0xff]  ;;  %1688 = vst [vmem:[#allocation2 + $0x30] sm:$0x3] %v4983_v37 }
  0x36   : > { %4635 = vmatprep.subr.bf16.mxu1 %v4634_v12  ;;  %4651 = vmatprep.subr.bf16.mxu0 %v4650_v19  ;;  %v5179_v27 = vld [vmem:[%s5074_s23 + $0x60] sm:$0xff]  ;;  %v5188_v28 = vld [vmem:[%s5074_s23 + $0x68] sm:$0xff]  ;;  %v5193_v29 = vld [vmem:[%s5074_s23 + $0x70] sm:$0xff]  ;;  %1689 = vst [vmem:[#allocation2 + $0x48] sm:$0x3] %v4983_v37 }
  0x37   : > { %4239 = vmatmul.mubr.msk.f32.vlgmr.msra.gmra.mrb[0].mxu0 %vm312_vm0, %v5096_v7  ;;  %v5202_v30 = vld [vmem:[%s5074_s23 + $0x78] sm:$0xff]  ;;  %v1742_v53 = vld [vmem:[#allocation3 + $0x8] sm:$0xff]  ;;  %v1743_v59 = vld [vmem:[#allocation3 + $0x10] sm:$0xff]  ;;  %1690 = vst [vmem:[#allocation2 + $0x60] sm:$0x3] %v4983_v37 }
  0x38   : > { %4130 = vmatmul.mubr.msk.f32.gmra.mrb[2].mxu1 %vm312_vm0, %v5112_v11  ;;  %4241 = vmatprep.mubr.msk.f32.mxu0 %vm312_vm0, %v5099_v8  ;;  %v4658_v54 = vpack.c.bf16 %v1742_v53, %v1741_v52  ;;  %v1744_v60 = vld [vmem:[#allocation3 + $0x18] sm:$0xff]  ;;  %v1746_v3 = vld [vmem:[#allocation3 + $0x28] sm:$0xff]  ;;  %v1747_v9 = vld [vmem:[#allocation3 + $0x30] sm:$0xff]  ;;  %1691 = vst [vmem:[#allocation2 + $0x78] sm:$0x3] %v4983_v37 }
  0x39   : > { %4132 = vmatprep.mubr.msk.f32.mxu1 %vm312_vm0, %v5121_v15  ;;  %4653 = vmatpush3.bf16.msra.mxu0 %v4650_v19  ;;  %v4662_v61 = vpack.c.bf16 %v1744_v60, %v1743_v59  ;;  %v1748_v10 = vld [vmem:[#allocation3 + $0x38] sm:$0xff]  ;;  %v1749_v16 = vld [vmem:[#allocation3 + $0x40] sm:$0xff]  ;;  %v1750_v17 = vld [vmem:[#allocation3 + $0x48] sm:$0xff]  ;;  %1692 = vst [vmem:[#allocation2 + $0x90] sm:$0x3] %v4983_v37 }
  0x3a   : > { %4659 = vmatprep.subr.bf16.mxu0 %v4658_v54  ;;  %v4674_v18 = vpack.c.bf16 %v1750_v17, %v1749_v16  ;;  %v1753_v34 = vld [vmem:[#allocation3 + $0x60] sm:$0xff]  ;;  %v1754_v35 = vld [vmem:[#allocation3 + $0x68] sm:$0xff]  ;;  %1693 = vst [vmem:[#allocation2 + $0xa8] sm:$0x3] %v4983_v37  ;;  %1694 = vst [vmem:[#allocation2 + $0x12] sm:$0x3] %v4983_v37 }
  0x3b   : > { %4242 = vmatmul.mubr.msk.f32.gmra.mrb[2].mxu0 %vm312_vm0, %v5112_v11  ;;  %1695 = vst [vmem:[#allocation2 + $0x2a] sm:$0x3] %v4983_v37  ;;  %1696 = vst [vmem:[#allocation2 + $0x42] sm:$0x3] %v4983_v37  ;;  %v1755_v60 = vld [vmem:[#allocation3 + $0x70] sm:$0xff]  ;;  %v1935_v16 = vld [vmem:[#allocation3 + $0x80] sm:$0xff] }
  0x3c   : > { %4133 = vmatmul.mubr.msk.f32.gmra.mrb[4].mxu1 %vm312_vm0, %v5134_v20  ;;  %4244 = vmatprep.mubr.msk.f32.mxu0 %vm312_vm0, %v5121_v15  ;;  %1697 = vst [vmem:[#allocation2 + $0x5a] sm:$0x3] %v4983_v37  ;;  %1698 = vst [vmem:[#allocation2 + $0x72] sm:$0x3] %v4983_v37  ;;  %v1936_v17 = vld [vmem:[#allocation3 + $0x88] sm:$0xff] }
  0x3d   : > { %4135 = vmatprep.mubr.msk.f32.mxu1 %vm312_vm0, %v5137_v21  ;;  %1699 = vst [vmem:[#allocation2 + $0x8a] sm:$0x3] %v4983_v37  ;;  %1700 = vst [vmem:[#allocation2 + $0xa2] sm:$0x3] %v4983_v37 }
  0x3e   : > { %1701 = vst [vmem:[#allocation2 + $0xba] sm:$0x3] %v4983_v37 }
  0x3f   : > { %4245 = vmatmul.mubr.msk.f32.gmra.mrb[4].mxu0 %vm312_vm0, %v5134_v20 }
  0x40   : > { %4136 = vmatmul.mubr.msk.f32.gmra.mrb[6].mxu1 %vm312_vm0, %v5146_v22  ;;  %4247 = vmatprep.mubr.msk.f32.mxu0 %vm312_vm0, %v5137_v21 }
  0x41   : > { %4138 = vmatprep.mubr.msk.f32.mxu1 %vm312_vm0, %v5151_v23 }
  0x43   : > { %4248 = vmatmul.mubr.msk.f32.gmra.mrb[6].mxu0 %vm312_vm0, %v5146_v22 }
  0x44   : > { %4139 = vmatmul.mubr.msk.f32.gmra.mrb[8].mxu1 %vm312_vm0, %v5160_v24  ;;  %4250 = vmatprep.mubr.msk.f32.mxu0 %vm312_vm0, %v5151_v23 }
  0x45   : > { %4141 = vmatprep.mubr.msk.f32.mxu1 %vm312_vm0, %v5165_v25 }
  0x47   : > { %4251 = vmatmul.mubr.msk.f32.gmra.mrb[8].mxu0 %vm312_vm0, %v5160_v24 }
  0x48   : > { %4142 = vmatmul.mubr.msk.f32.gmra.mrb[10].mxu1 %vm312_vm0, %v5174_v26  ;;  %4253 = vmatprep.mubr.msk.f32.mxu0 %vm312_vm0, %v5165_v25 }
  0x49   : > { %4144 = vmatprep.mubr.msk.f32.mxu1 %vm312_vm0, %v5179_v27 }
  0x4b   : > { %4254 = vmatmul.mubr.msk.f32.gmra.mrb[10].mxu0 %vm312_vm0, %v5174_v26 }
  0x4c   : > { %4145 = vmatmul.mubr.msk.f32.gmra.mrb[12].mxu1 %vm312_vm0, %v5188_v28  ;;  %4256 = vmatprep.mubr.msk.f32.mxu0 %vm312_vm0, %v5179_v27 }
  0x4d   : > { %4147 = vmatprep.mubr.msk.f32.mxu1 %vm312_vm0, %v5193_v29 }
  0x4f   : > { %4257 = vmatmul.mubr.msk.f32.gmra.mrb[12].mxu0 %vm312_vm0, %v5188_v28 }
  0x50   : > { %4148 = vmatmul.mubr.msk.f32.gmra.mrb[14].mxu1 %vm312_vm0, %v5202_v30  ;;  %4259 = vmatprep.mubr.msk.f32.mxu0 %vm312_vm0, %v5193_v29 }
  0x51   : > { %4154 = vmatprep.mubr.msk.f32.mxu1 %vm312_vm0, %v5083_v2 }
  0x53   : > { %4260 = vmatmul.mubr.msk.f32.gmra.mrb[14].mxu0 %vm312_vm0, %v5202_v30 }
  0x54   : > { %4155 = vmatmul.mubr.msk.f32.vlgmr.msra.gmra.mrb[16].mxu1 %vm312_vm0, %v5096_v7  ;;  %4294 = vmatprep.mubr.msk.f32.mxu0 %vm312_vm0, %v5083_v2 }
  0x55   : > { %4637 = vmatpush3.bf16.msra.mxu1 %v4634_v12  ;;  %4157 = vmatprep.mubr.msk.f32.mxu1 %vm312_vm0, %v5099_v8 }
  0x56   : > { %4639 = vmatprep.subr.bf16.mxu1 %v4638_v33 }
  0x57   : > { %4295 = vmatmul.mubr.msk.f32.vlgmr.msra.gmra.mrb[16].mxu0 %vm312_vm0, %v5096_v7 }
  0x58   : > { %4158 = vmatmul.mubr.msk.f32.gmra.mrb[18].mxu1 %vm312_vm0, %v5112_v11  ;;  %4297 = vmatprep.mubr.msk.f32.mxu0 %vm312_vm0, %v5099_v8 }
  0x59   : > { %4160 = vmatprep.mubr.msk.f32.mxu1 %vm312_vm0, %v5121_v15  ;;  %4661 = vmatpush3.bf16.msra.mxu0 %v4658_v54 }
  0x5a   : > { %4663 = vmatprep.subr.bf16.mxu0 %v4662_v61 }
  0x5b   : > { %4298 = vmatmul.mubr.msk.f32.gmra.mrb[18].mxu0 %vm312_vm0, %v5112_v11 }
  0x5c   : > { %4161 = vmatmul.mubr.msk.f32.gmra.mrb[20].mxu1 %vm312_vm0, %v5134_v20  ;;  %4300 = vmatprep.mubr.msk.f32.mxu0 %vm312_vm0, %v5121_v15 }
  0x5d   : > { %4163 = vmatprep.mubr.msk.f32.mxu1 %vm312_vm0, %v5137_v21  ;;  %4665 = vmatpush3.bf16.msra.mxu0 %v4662_v61  ;;  %v1756_v61 = vld [vmem:[#allocation3 + $0x78] sm:$0xff] }
  0x5f   : > { %4301 = vmatmul.mubr.msk.f32.gmra.mrb[20].mxu0 %vm312_vm0, %v5134_v20 }
  0x60   : > { %4164 = vmatmul.mubr.msk.f32.gmra.mrb[22].mxu1 %vm312_vm0, %v5146_v22  ;;  %4303 = vmatprep.mubr.msk.f32.mxu0 %vm312_vm0, %v5137_v21 }
  0x61   : > { %4166 = vmatprep.mubr.msk.f32.mxu1 %vm312_vm0, %v5151_v23 }
  0x63   : > { %4304 = vmatmul.mubr.msk.f32.gmra.mrb[22].mxu0 %vm312_vm0, %v5146_v22 }
  0x64   : > { %4167 = vmatmul.mubr.msk.f32.gmra.mrb[24].mxu1 %vm312_vm0, %v5160_v24  ;;  %4306 = vmatprep.mubr.msk.f32.mxu0 %vm312_vm0, %v5151_v23 }
  0x65   : > { %4169 = vmatprep.mubr.msk.f32.mxu1 %vm312_vm0, %v5165_v25 }
  0x67   : > { %4307 = vmatmul.mubr.msk.f32.gmra.mrb[24].mxu0 %vm312_vm0, %v5160_v24 }
  0x68   : > { %4170 = vmatmul.mubr.msk.f32.gmra.mrb[26].mxu1 %vm312_vm0, %v5174_v26  ;;  %4309 = vmatprep.mubr.msk.f32.mxu0 %vm312_vm0, %v5165_v25 }
  0x69   : > { %4172 = vmatprep.mubr.msk.f32.mxu1 %vm312_vm0, %v5179_v27 }
  0x6b   : > { %4310 = vmatmul.mubr.msk.f32.gmra.mrb[26].mxu0 %vm312_vm0, %v5174_v26 }
  0x6c   : > { %4173 = vmatmul.mubr.msk.f32.gmra.mrb[28].mxu1 %vm312_vm0, %v5188_v28  ;;  %4312 = vmatprep.mubr.msk.f32.mxu0 %vm312_vm0, %v5179_v27 }
  0x6d   : > { %4175 = vmatprep.mubr.msk.f32.mxu1 %vm312_vm0, %v5193_v29 }
  0x6f   : > { %4313 = vmatmul.mubr.msk.f32.gmra.mrb[28].mxu0 %vm312_vm0, %v5188_v28 }
  0x70   : > { %4176 = vmatmul.mubr.msk.f32.gmra.mrb[30].mxu1 %vm312_vm0, %v5202_v30  ;;  %4315 = vmatprep.mubr.msk.f32.mxu0 %vm312_vm0, %v5193_v29 }
  0x71   : > { %4182 = vmatprep.mubr.msk.f32.mxu1 %vm312_vm0, %v5083_v2 }
  0x73   : > { %4316 = vmatmul.mubr.msk.f32.gmra.mrb[30].mxu0 %vm312_vm0, %v5202_v30 }
  0x74   : > { %4183 = vmatmul.mubr.msk.f32.vlgmr.msra.gmra.mrb[32].mxu1 %vm312_vm0, %v5096_v7 }
  0x75   : > { %4641 = vmatpush3.bf16.msra.mxu1 %v4638_v33  ;;  %4185 = vmatprep.mubr.msk.f32.mxu1 %vm312_vm0, %v5099_v8 }
  0x76   : > { %4647 = vmatprep.subr.bf16.mxu1 %v4646_v36 }
  0x78   : > { %4186 = vmatmul.mubr.msk.f32.gmra.mrb[34].mxu1 %vm312_vm0, %v5112_v11 }
  0x79   : > { %4188 = vmatprep.mubr.msk.f32.mxu1 %vm312_vm0, %v5121_v15 }
  0x7c   : > { %4189 = vmatmul.mubr.msk.f32.gmra.mrb[36].mxu1 %vm312_vm0, %v5134_v20 }
  0x7d   : > { %4191 = vmatprep.mubr.msk.f32.mxu1 %vm312_vm0, %v5137_v21 }
  0x80   : > { %4192 = vmatmul.mubr.msk.f32.gmra.mrb[38].mxu1 %vm312_vm0, %v5146_v22 }
  0x81   : > { %4194 = vmatprep.mubr.msk.f32.mxu1 %vm312_vm0, %v5151_v23 }
  0x84   : > { %4195 = vmatmul.mubr.msk.f32.gmra.mrb[40].mxu1 %vm312_vm0, %v5160_v24 }
  0x85   : > { %4197 = vmatprep.mubr.msk.f32.mxu1 %vm312_vm0, %v5165_v25 }
  0x88   : > { %4198 = vmatmul.mubr.msk.f32.gmra.mrb[42].mxu1 %vm312_vm0, %v5174_v26 }
  0x89   : > { %4200 = vmatprep.mubr.msk.f32.mxu1 %vm312_vm0, %v5179_v27 }
  0x8c   : > { %4201 = vmatmul.mubr.msk.f32.gmra.mrb[44].mxu1 %vm312_vm0, %v5188_v28 }
  0x8d   : > { %4203 = vmatprep.mubr.msk.f32.mxu1 %vm312_vm0, %v5193_v29 }
  0x90   : > { %4204 = vmatmul.mubr.msk.f32.gmra.mrb[46].mxu1 %vm312_vm0, %v5202_v30 }
  0x91   : > { %4210 = vmatprep.mubr.msk.f32.mxu1 %vm312_vm0, %v5083_v2 }
  0x94   : > { %4211 = vmatmul.mubr.msk.f32.vlgmr.msra.gmra.mrb[48].mxu1 %vm312_vm0, %v5096_v7 }
  0x95   : > { %4649 = vmatpush3.bf16.msra.mxu1 %v4646_v36  ;;  %4213 = vmatprep.mubr.msk.f32.mxu1 %vm312_vm0, %v5099_v8  ;;  %v4682_v36 = vpack.c.bf16 %v1754_v35, %v1753_v34 }
  0x96   : > { %4655 = vmatprep.subr.bf16.mxu1 %v4654_v39 }
  0x98   : > { %4214 = vmatmul.mubr.msk.f32.gmra.mrb[50].mxu1 %vm312_vm0, %v5112_v11 }
  0x99   : > { %4216 = vmatprep.mubr.msk.f32.mxu1 %vm312_vm0, %v5121_v15 }
  0x9c   : > { %4217 = vmatmul.mubr.msk.f32.gmra.mrb[52].mxu1 %vm312_vm0, %v5134_v20 }
  0x9d   : > { %4219 = vmatprep.mubr.msk.f32.mxu1 %vm312_vm0, %v5137_v21 }
  0xa0   : > { %4220 = vmatmul.mubr.msk.f32.gmra.mrb[54].mxu1 %vm312_vm0, %v5146_v22 }
  0xa1   : > { %4222 = vmatprep.mubr.msk.f32.mxu1 %vm312_vm0, %v5151_v23 }
  0xa4   : > { %4223 = vmatmul.mubr.msk.f32.gmra.mrb[56].mxu1 %vm312_vm0, %v5160_v24 }
  0xa5   : > { %4225 = vmatprep.mubr.msk.f32.mxu1 %vm312_vm0, %v5165_v25 }
  0xa8   : > { %4226 = vmatmul.mubr.msk.f32.gmra.mrb[58].mxu1 %vm312_vm0, %v5174_v26 }
  0xa9   : > { %4228 = vmatprep.mubr.msk.f32.mxu1 %vm312_vm0, %v5179_v27 }
  0xac   : > { %4229 = vmatmul.mubr.msk.f32.gmra.mrb[60].mxu1 %vm312_vm0, %v5188_v28 }
  0xad   : > { %4231 = vmatprep.mubr.msk.f32.mxu1 %vm312_vm0, %v5193_v29 }
  0xb0   : > { %4232 = vmatmul.mubr.msk.f32.gmra.mrb[62].mxu1 %vm312_vm0, %v5202_v30 }
  0xb1   : > { %4266 = vmatprep.mubr.msk.f32.mxu1 %vm312_vm0, %v5083_v2 }
  0xb4   : > { %4267 = vmatmul.mubr.msk.f32.vlgmr.msra.gmra.mrb[64].mxu1 %vm312_vm0, %v5096_v7 }
  0xb5   : > { %4657 = vmatpush3.bf16.msra.mxu1 %v4654_v39  ;;  %4269 = vmatprep.mubr.msk.f32.mxu1 %vm312_vm0, %v5099_v8 }
  0xb8   : > { %4270 = vmatmul.mubr.msk.f32.gmra.mrb[66].mxu1 %vm312_vm0, %v5112_v11 }
  0xb9   : > { %4272 = vmatprep.mubr.msk.f32.mxu1 %vm312_vm0, %v5121_v15 }
  0xbc   : > { %4273 = vmatmul.mubr.msk.f32.gmra.mrb[68].mxu1 %vm312_vm0, %v5134_v20 }
  0xbd   : > { %4275 = vmatprep.mubr.msk.f32.mxu1 %vm312_vm0, %v5137_v21 }
  0xc0   : > { %4276 = vmatmul.mubr.msk.f32.gmra.mrb[70].mxu1 %vm312_vm0, %v5146_v22 }
  0xc1   : > { %4278 = vmatprep.mubr.msk.f32.mxu1 %vm312_vm0, %v5151_v23 }
  0xc4   : > { %4279 = vmatmul.mubr.msk.f32.gmra.mrb[72].mxu1 %vm312_vm0, %v5160_v24 }
  0xc5   : > { %4281 = vmatprep.mubr.msk.f32.mxu1 %vm312_vm0, %v5165_v25 }
  0xc8   : > { %4282 = vmatmul.mubr.msk.f32.gmra.mrb[74].mxu1 %vm312_vm0, %v5174_v26 }
  0xc9   : > { %4284 = vmatprep.mubr.msk.f32.mxu1 %vm312_vm0, %v5179_v27 }
  0xcc   : > { %4285 = vmatmul.mubr.msk.f32.gmra.mrb[76].mxu1 %vm312_vm0, %v5188_v28 }
  0xcd   : > { %4287 = vmatprep.mubr.msk.f32.mxu1 %vm312_vm0, %v5193_v29 }
  0xd0   : > { %4288 = vmatmul.mubr.msk.f32.gmra.mrb[78].mxu1 %vm312_vm0, %v5202_v30 }
  0xd1   : > { %4322 = vmatprep.mubr.msk.f32.mxu1 %vm312_vm0, %v5083_v2  ;;  %v1745_v2 = vld [vmem:[#allocation3 + $0x20] sm:$0xff] }
  0xd2   : > { %v4666_v4 = vpack.c.bf16 %v1746_v3, %v1745_v2  ;;  %v4686_v2 = vpack.c.bf16 %v1756_v61, %v1755_v60 }
  0xd4   : > { %4323 = vmatmul.mubr.msk.f32.vlgmr.msra.gmra.mrb[80].mxu1 %vm312_vm0, %v5096_v7  ;;  %4667 = vmatprep.subr.bf16.mxu0 %v4666_v4 }
  0xd5   : > { %4325 = vmatprep.mubr.msk.f32.mxu1 %vm312_vm0, %v5099_v8  ;;  %4669 = vmatpush3.bf16.msra.mxu0 %v4666_v4 }
  0xd8   : > { %4326 = vmatmul.mubr.msk.f32.gmra.mrb[82].mxu1 %vm312_vm0, %v5112_v11  ;;  %v4670_v11 = vpack.c.bf16 %v1748_v10, %v1747_v9 }
  0xd9   : > { %4328 = vmatprep.mubr.msk.f32.mxu1 %vm312_vm0, %v5121_v15 }
  0xda   : > { %4671 = vmatprep.subr.bf16.mxu0 %v4670_v11 }
  0xdb   : > { %4673 = vmatpush3.bf16.msra.mxu0 %v4670_v11 }
  0xdc   : > { %4329 = vmatmul.mubr.msk.f32.gmra.mrb[84].mxu1 %vm312_vm0, %v5134_v20  ;;  %4675 = vmatprep.subr.bf16.mxu0 %v4674_v18 }
  0xdd   : > { %4331 = vmatprep.mubr.msk.f32.mxu1 %vm312_vm0, %v5137_v21 }
  0xdf   : > { %4677 = vmatpush3.bf16.msra.mxu0 %v4674_v18  ;;  %v5520_v18 = vpack.c.bf16 %v1936_v17, %v1935_v16 }
  0xe0   : > { %4332 = vmatmul.mubr.msk.f32.gmra.mrb[86].mxu1 %vm312_vm0, %v5146_v22 }
  0xe1   : > { %4334 = vmatprep.mubr.msk.f32.mxu1 %vm312_vm0, %v5151_v23  ;;  %5928 = vst [vmem:[#allocation6_spill] sm:$0xff] %v5520_v18 }
  0xe4   : > { %4335 = vmatmul.mubr.msk.f32.gmra.mrb[88].mxu1 %vm312_vm0, %v5160_v24 }
  0xe5   : > { %4337 = vmatprep.mubr.msk.f32.mxu1 %vm312_vm0, %v5165_v25  ;;  %v1751_v25 = vld [vmem:[#allocation3 + $0x50] sm:$0xff] }
  0xe8   : > { %4338 = vmatmul.mubr.msk.f32.gmra.mrb[90].mxu1 %vm312_vm0, %v5174_v26  ;;  %v1752_v26 = vld [vmem:[#allocation3 + $0x58] sm:$0xff] }
  0xe9   : > { %4340 = vmatprep.mubr.msk.f32.mxu1 %vm312_vm0, %v5179_v27  ;;  %v4678_v27 = vpack.c.bf16 %v1752_v26, %v1751_v25 }
  0xeb   : > { %4679 = vmatprep.subr.bf16.mxu0 %v4678_v27 }
  0xec   : > { %4341 = vmatmul.mubr.msk.f32.gmra.mrb[92].mxu1 %vm312_vm0, %v5188_v28  ;;  %4681 = vmatpush3.bf16.msra.mxu0 %v4678_v27 }
  0xed   : > { %4343 = vmatprep.mubr.msk.f32.mxu1 %vm312_vm0, %v5193_v29  ;;  %4683 = vmatprep.subr.bf16.mxu0 %v4682_v36 }
  0xf0   : > { %4344 = vmatmul.mubr.msk.f32.gmra.mrb[94].mxu1 %vm312_vm0, %v5202_v30  ;;  %4685 = vmatpush3.bf16.msra.mxu0 %v4682_v36 }
  0xf1   : > { %4687 = vmatprep.subr.bf16.mxu0 %v4686_v2 }
  0xf4   : > { %4689 = vmatpush3.bf16.msra.mxu0 %v4686_v2 }
  0xf5   : > { %4691 = vmatprep.subr.bf16.mxu0 %v5520_v18 }
 0x107   : > { %v5428_v40 = vpop.f32.mrb[0].mxu1 }
 0x108   : > { %v5430_v41 = vpop.f32.mrb[1].mxu1 }
 0x10a   : > { %v5438_v45 = vpop.f32.mrb[0].mxu0 }
 0x10b   : > { %v5432_v42 = vpop.f32.mrb[2].mxu1  ;;  %v5442_v47 = vpop.f32.mrb[1].mxu0 }
 0x10c   : > { %v5434_v43 = vpop.f32.mrb[3].mxu1 }
 0x10e   : > { %v5446_v49 = vpop.f32.mrb[2].mxu0 }
 0x10f   : > { %v5436_v44 = vpop.f32.mrb[4].mxu1  ;;  %v5450_v51 = vpop.f32.mrb[3].mxu0 }
 0x110   : > { %v5440_v46 = vpop.f32.mrb[5].mxu1 }
 0x112   : > { %v5454_v56 = vpop.f32.mrb[4].mxu0 }
 0x113   : > { %v5444_v48 = vpop.f32.mrb[6].mxu1  ;;  %v5458_v58 = vpop.f32.mrb[5].mxu0 }
 0x114   : > { %v5448_v50 = vpop.f32.mrb[7].mxu1 }
 0x116   : > { %v5462_v63 = vpop.f32.mrb[6].mxu0 }
 0x117   : > { %v5452_v55 = vpop.f32.mrb[8].mxu1  ;;  %v5466_v1 = vpop.f32.mrb[7].mxu0 }
 0x118   : > { %v5456_v57 = vpop.f32.mrb[9].mxu1 }
 0x11a   : > { %v5470_v6 = vpop.f32.mrb[8].mxu0 }
 0x11b   : > { %v5460_v62 = vpop.f32.mrb[10].mxu1  ;;  %v5474_v8 = vpop.f32.mrb[9].mxu0 }
 0x11c   : > { %v5464_v0 = vpop.f32.mrb[11].mxu1 }
 0x11e   : > { %v5478_v13 = vpop.f32.mrb[10].mxu0 }
 0x11f   : > { %v5468_v5 = vpop.f32.mrb[12].mxu1  ;;  %v5482_v15 = vpop.f32.mrb[11].mxu0 }
 0x120   : > { %v5472_v7 = vpop.f32.mrb[13].mxu1 }
 0x122   : > { %v5486_v20 = vpop.f32.mrb[12].mxu0 }
 0x123   : > { %v5476_v12 = vpop.f32.mrb[14].mxu1  ;;  %v5492_v23 = vpop.f32.mrb[13].mxu0 }
 0x124   : > { %v5480_v14 = vpop.f32.mrb[15].mxu1 }
 0x126   : > { %v5498_v29 = vpop.f32.mrb[14].mxu0 }
 0x127   : > { %v5484_v19 = vpop.f32.mrb[16].mxu1  ;;  %v5504_v32 = vpop.f32.mrb[15].mxu0 }
 0x128   : > { %v654_v21 = vmax.f32 %v5428_v40, %v5484_v19  ;;  %v5490_v22 = vpop.f32.mrb[17].mxu1 }
 0x129   : > { %v653_v24 = vmax.f32 %v5430_v41, %v5490_v22 }
 0x12a   : > { %v5508_v39 = vpop.f32.mrb[16].mxu0 }
 0x12b   : > { %v5496_v28 = vpop.f32.mrb[18].mxu1  ;;  %v5511_v54 = vpop.f32.mrb[17].mxu0 }
 0x12c   : > { %v656_v30 = vmax.f32 %v5432_v42, %v5496_v28  ;;  %v5502_v31 = vpop.f32.mrb[19].mxu1 }
 0x12d   : > { %v655_v33 = vmax.f32 %v5434_v43, %v5502_v31 }
 0x12e   : > { %v5514_v4 = vpop.f32.mrb[18].mxu0 }
 0x12f   : > { %v4162_v38 = vpop.f32.mrb[20].mxu1  ;;  %v5517_v11 = vpop.f32.mrb[19].mxu0 }
 0x130   : > { %v658_v52 = vmax.f32 %v5436_v44, %v4162_v38  ;;  %v594_v53 = vpop.f32.mrb[21].mxu1 }
 0x131   : > { %v657_v59 = vmax.f32 %v5440_v46, %v594_v53 }
 0x132   : > { %v5522_v25 = vpop.f32.mrb[20].mxu0 }
 0x133   : > { %v4165_v3 = vpop.f32.mrb[22].mxu1  ;;  %v5525_v34 = vpop.f32.mrb[21].mxu0 }
 0x134   : > { %v660_v9 = vmax.f32 %v5444_v48, %v4165_v3  ;;  %v604_v10 = vpop.f32.mrb[23].mxu1 }
 0x135   : > { %v659_v44 = vmax.f32 %v5448_v50, %v604_v10 }
 0x136   : > { %v5529_v36 = vpop.f32.mrb[22].mxu0 }
 0x137   : > { %v4168_v46 = vpop.f32.mrb[24].mxu1  ;;  %v5532_v38 = vpop.f32.mrb[23].mxu0 }
 0x138   : > { %v662_v26 = vmax.f32 %v5452_v55, %v4168_v46  ;;  %v614_v27 = vpop.f32.mrb[25].mxu1 }
 0x139   : > { %v661_v48 = vmax.f32 %v5456_v57, %v614_v27 }
 0x13a   : > { %v5535_v61 = vpop.f32.mrb[24].mxu0 }
 0x13b   : > { %v4171_v35 = vpop.f32.mrb[26].mxu1  ;;  %v5538_v3 = vpop.f32.mrb[25].mxu0 }
 0x13c   : > { %v664_v50 = vmax.f32 %v5460_v62, %v4171_v35  ;;  %v624_v37 = vpop.f32.mrb[27].mxu1 }
 0x13d   : > { %v663_v53 = vmax.f32 %v5464_v0, %v624_v37 }
 0x13e   : > { %v5541_v16 = vpop.f32.mrb[26].mxu0 }
 0x13f   : > { %v4174_v60 = vpop.f32.mrb[28].mxu1  ;;  %5929 = vst [vmem:[#allocation7_spill] sm:$0xff] %v5541_v16  ;;  %v5544_v46 = vpop.f32.mrb[27].mxu0 }
 0x140   : > { %v666_v55 = vmax.f32 %v5468_v5, %v4174_v60  ;;  %v634_v2 = vpop.f32.mrb[29].mxu1  ;;  %5930 = vst [vmem:[#allocation8_spill] sm:$0xff] %v5544_v46 }
 0x141   : > { %v665_v57 = vmax.f32 %v5472_v7, %v634_v2 }
 0x142   : > { %v5547_v35 = vpop.f32.mrb[28].mxu0 }
 0x143   : > { %v4177_v10 = vpop.f32.mrb[30].mxu1  ;;  %5931 = vst [vmem:[#allocation9_spill] sm:$0xff] %v5547_v35  ;;  %v5552_v60 = vpop.f32.mrb[29].mxu0 }
 0x144   : > { %v668_v62 = vmax.f32 %v5476_v12, %v4177_v10  ;;  %v644_v17 = vpop.f32.mrb[31].mxu1  ;;  %5932 = vst [vmem:[#allocation10_spill] sm:$0xff] %v5552_v60 }
 0x145   : > { %v667_v0 = vmax.f32 %v5480_v14, %v644_v17 }
 0x146   : > { %v5557_v2 = vpop.f32.mrb[30].mxu0 }
 0x147   : > { %v4184_v27 = vpop.f32.mrb[32].mxu1  ;;  %5933 = vst [vmem:[#allocation11_spill] sm:$0xff] %v5557_v2  ;;  %v5562_v17 = vpop.f32.mrb[31].mxu0 }
 0x148   : > { %v817_v5 = vmax.f32 %v654_v21, %v4184_v27  ;;  %v737_v37 = vpop.f32.mrb[33].mxu1  ;;  %5934 = vst [vmem:[#allocation12_spill] sm:$0xff] %v5562_v17 }
 0x149   : > { %v816_v7 = vmax.f32 %v653_v24, %v737_v37 }
 0x14b   : > { %v4187_v12 = vpop.f32.mrb[34].mxu1 }
 0x14c   : > { %v819_v14 = vmax.f32 %v656_v30, %v4187_v12  ;;  %v747_v10 = vpop.f32.mrb[35].mxu1 }
 0x14d   : > { %v818_v40 = vmax.f32 %v655_v33, %v747_v10 }
 0x14f   : > { %v4190_v19 = vpop.f32.mrb[36].mxu1 }
 0x150   : > { %v821_v21 = vmax.f32 %v658_v52, %v4190_v19  ;;  %v757_v27 = vpop.f32.mrb[37].mxu1 }
 0x151   : > { %v820_v18 = vmax.f32 %v657_v59, %v757_v27 }
 0x153   : > { %v4193_v41 = vpop.f32.mrb[38].mxu1 }
 0x154   : > { %v823_v22 = vmax.f32 %v660_v9, %v4193_v41  ;;  %v767_v24 = vpop.f32.mrb[39].mxu1 }
 0x155   : > { %v822_v37 = vmax.f32 %v659_v44, %v767_v24 }
 0x157   : > { %v4196_v2 = vpop.f32.mrb[40].mxu1 }
 0x158   : > { %v825_v60 = vmax.f32 %v662_v26, %v4196_v2  ;;  %v777_v35 = vpop.f32.mrb[41].mxu1 }
 0x159   : > { %v824_v42 = vmax.f32 %v661_v48, %v777_v35 }
 0x15b   : > { %v4199_v28 = vpop.f32.mrb[42].mxu1 }
 0x15c   : > { %v827_v30 = vmax.f32 %v664_v50, %v4199_v28  ;;  %v787_v12 = vpop.f32.mrb[43].mxu1 }
 0x15d   : > { %v826_v17 = vmax.f32 %v663_v53, %v787_v12 }
 0x15f   : > { %v4202_v46 = vpop.f32.mrb[44].mxu1 }
 0x160   : > { %v829_v16 = vmax.f32 %v666_v55, %v4202_v46  ;;  %v797_v43 = vpop.f32.mrb[45].mxu1 }
 0x161   : > { %v828_v31 = vmax.f32 %v665_v57, %v797_v43 }
 0x163   : > { %v4205_v33 = vpop.f32.mrb[46].mxu1 }
 0x164   : > { %v831_v52 = vmax.f32 %v668_v62, %v4205_v33  ;;  %v807_v10 = vpop.f32.mrb[47].mxu1 }
 0x165   : > { %v830_v59 = vmax.f32 %v667_v0, %v807_v10 }
 0x167   : > { %v4212_v19 = vpop.f32.mrb[48].mxu1 }
 0x168   : > { %v980_v9 = vmax.f32 %v817_v5, %v4212_v19  ;;  %v900_v27 = vpop.f32.mrb[49].mxu1 }
 0x169   : > { %v979_v44 = vmax.f32 %v816_v7, %v900_v27 }
 0x16a   : > { %v1143_v26 = vmax.f32 %v980_v9, %v5438_v45 }
 0x16b   : > { %v1142_v48 = vmax.f32 %v979_v44, %v5442_v47  ;;  %v4215_v35 = vpop.f32.mrb[50].mxu1 }
 0x16c   : > { %v982_v50 = vmax.f32 %v819_v14, %v4215_v35  ;;  %v910_v2 = vpop.f32.mrb[51].mxu1 }
 0x16d   : > { %v981_v53 = vmax.f32 %v818_v40, %v910_v2 }
 0x16e   : > { %v1145_v55 = vmax.f32 %v982_v50, %v5446_v49 }
 0x16f   : > { %v1144_v57 = vmax.f32 %v981_v53, %v5450_v51  ;;  %v4218_v46 = vpop.f32.mrb[52].mxu1 }
 0x170   : > { %v984_v62 = vmax.f32 %v821_v21, %v4218_v46  ;;  %v920_v41 = vpop.f32.mrb[53].mxu1 }
 0x171   : > { %v983_v0 = vmax.f32 %v820_v18, %v920_v41 }
 0x172   : > { %v1147_v5 = vmax.f32 %v984_v62, %v5454_v56 }
 0x173   : > { %v1146_v7 = vmax.f32 %v983_v0, %v5458_v58  ;;  %v4221_v24 = vpop.f32.mrb[54].mxu1 }
 0x174   : > { %v986_v45 = vmax.f32 %v823_v22, %v4221_v24  ;;  %v930_v28 = vpop.f32.mrb[55].mxu1 }
 0x175   : > { %v985_v47 = vmax.f32 %v822_v37, %v930_v28 }
 0x176   : > { %v1149_v14 = vmax.f32 %v986_v45, %v5462_v63 }
 0x177   : > { %v1148_v40 = vmax.f32 %v985_v47, %v5466_v1  ;;  %v4224_v12 = vpop.f32.mrb[56].mxu1 }
 0x178   : > { %v988_v49 = vmax.f32 %v825_v60, %v4224_v12  ;;  %v940_v43 = vpop.f32.mrb[57].mxu1 }
 0x179   : > { %v987_v51 = vmax.f32 %v824_v42, %v940_v43 }
 0x17a   : > { %v1151_v21 = vmax.f32 %v988_v49, %v5470_v6 }
 0x17b   : > { %v1150_v18 = vmax.f32 %v987_v51, %v5474_v8  ;;  %v4227_v33 = vpop.f32.mrb[58].mxu1 }
 0x17c   : > { %v990_v56 = vmax.f32 %v827_v30, %v4227_v33  ;;  %v950_v10 = vpop.f32.mrb[59].mxu1 }
 0x17d   : > { %v989_v58 = vmax.f32 %v826_v17, %v950_v10 }
 0x17e   : > { %v1153_v22 = vmax.f32 %v990_v56, %v5478_v13 }
 0x17f   : > { %v1152_v37 = vmax.f32 %v989_v58, %v5482_v15  ;;  %v4230_v19 = vpop.f32.mrb[60].mxu1 }
 0x180   : > { %v992_v63 = vmax.f32 %v829_v16, %v4230_v19  ;;  %v960_v9 = vpop.f32.mrb[61].mxu1  ;;  %v5940_v19 = vld [vmem:[#allocation12_spill] sm:$0xff] }
 0x181   : > { %v991_v1 = vmax.f32 %v828_v31, %v960_v9 }
 0x182   : > { %v1155_v60 = vmax.f32 %v992_v63, %v5486_v20 }
 0x183   : > { %v1154_v42 = vmax.f32 %v991_v1, %v5492_v23  ;;  %v4233_v27 = vpop.f32.mrb[62].mxu1  ;;  %v5622_v1 = vld [vmem:[%s5914_s2] ss:$0 sm:$0xff] }
 0x184   : > { %v994_v6 = vmax.f32 %v831_v52, %v4233_v27  ;;  %v970_v44 = vpop.f32.mrb[63].mxu1 }
 0x185   : > { %v993_v8 = vmax.f32 %v830_v59, %v970_v44 }
 0x186   : > { %v1157_v30 = vmax.f32 %v994_v6, %v5498_v29 }
 0x187   : > { %v1156_v17 = vmax.f32 %v993_v8, %v5504_v32  ;;  %v4268_v35 = vpop.f32.mrb[64].mxu1 }
 0x188   : > { %v1306_v13 = vmax.f32 %v1143_v26, %v4268_v35  ;;  %v1226_v50 = vpop.f32.mrb[65].mxu1 }
 0x189   : > { %v1305_v15 = vmax.f32 %v1142_v48, %v1226_v50 }
 0x18a   : > { %v1469_v16 = vmax.f32 %v1306_v13, %v5508_v39 }
 0x18b   : > { %v1468_v31 = vmax.f32 %v1305_v15, %v5511_v54  ;;  %v4271_v2 = vpop.f32.mrb[66].mxu1 }
 0x18c   : > { %v1308_v20 = vmax.f32 %v1145_v55, %v4271_v2  ;;  %v1236_v53 = vpop.f32.mrb[67].mxu1 }
 0x18d   : > { %v1307_v23 = vmax.f32 %v1144_v57, %v1236_v53 }
 0x18e   : > { %v1471_v52 = vmax.f32 %v1308_v20, %v5514_v4 }
 0x18f   : > { %v1470_v59 = vmax.f32 %v1307_v23, %v5517_v11  ;;  %v4274_v46 = vpop.f32.mrb[68].mxu1 }
 0x190   : > { %v1310_v29 = vmax.f32 %v1147_v5, %v4274_v46  ;;  %v1246_v62 = vpop.f32.mrb[69].mxu1 }
 0x191   : > { %v1309_v32 = vmax.f32 %v1146_v7, %v1246_v62  ;;  %v1937_v62 = vld [vmem:[#allocation3 + $0x90] sm:$0xff] }
 0x192   : > { %v1473_v26 = vmax.f32 %v1310_v29, %v5522_v25 }
 0x193   : > { %v1472_v48 = vmax.f32 %v1309_v32, %v5525_v34  ;;  %v4277_v41 = vpop.f32.mrb[70].mxu1  ;;  %v1938_v32 = vld [vmem:[#allocation3 + $0x98] sm:$0xff] }
 0x194   : > { %v1312_v39 = vmax.f32 %v1149_v14, %v4277_v41  ;;  %v1256_v0 = vpop.f32.mrb[71].mxu1  ;;  %v5935_v14 = vld [vmem:[#allocation7_spill] sm:$0xff] }
 0x195   : > { %v1311_v54 = vmax.f32 %v1148_v40, %v1256_v0  ;;  %v5936_v40 = vld [vmem:[#allocation8_spill] sm:$0xff] }
 0x196   : > { %v5590_v55 = vmax.f32 %v1312_v39, %v5529_v36 }
 0x197   : > { %v5593_v57 = vmax.f32 %v1311_v54, %v5532_v38  ;;  %v4280_v4 = vpop.f32.mrb[72].mxu1 }
 0x198   : > { %v1314_v11 = vmax.f32 %v1151_v21, %v4280_v4  ;;  %v1266_v24 = vpop.f32.mrb[73].mxu1  ;;  %v5937_v21 = vld [vmem:[#allocation9_spill] sm:$0xff] }
 0x199   : > { %v1313_v5 = vmax.f32 %v1150_v18, %v1266_v24  ;;  %v5938_v18 = vld [vmem:[#allocation10_spill] sm:$0xff]  ;;  %v4694_v24 = vpack.c.bf16 %v1938_v32, %v1937_v62 }
 0x19a   : > { %v5596_v7 = vmax.f32 %v1314_v11, %v5535_v61 }
 0x19b   : > { %v5599_v25 = vmax.f32 %v1313_v5, %v5538_v3  ;;  %v4283_v34 = vpop.f32.mrb[74].mxu1 }
 0x19c   : > { %v1316_v45 = vmax.f32 %v1153_v22, %v4283_v34  ;;  %v1276_v28 = vpop.f32.mrb[75].mxu1  ;;  %v5939_v22 = vld [vmem:[#allocation11_spill] sm:$0xff]  ;;  %v1939_v34 = vld [vmem:[#allocation3 + $0xa0] sm:$0xff] }
 0x19d   : > { %v1315_v47 = vmax.f32 %v1152_v37, %v1276_v28 }
 0x19e   : > { %v5602_v36 = vmax.f32 %v1316_v45, %v5935_v14  ;;  %v1940_v45 = vld [vmem:[#allocation3 + $0xa8] sm:$0xff] }
 0x19f   : > { %v5605_v38 = vmax.f32 %v1315_v47, %v5936_v40  ;;  %v4286_v12 = vpop.f32.mrb[76].mxu1 }
 0x1a0   : > { %v1318_v49 = vmax.f32 %v1155_v60, %v4286_v12  ;;  %v1286_v43 = vpop.f32.mrb[77].mxu1  ;;  %v5941_v12 = vld [vmem:[#allocation6_spill] sm:$0xff] }
 0x1a1   : > { %v1317_v51 = vmax.f32 %v1154_v42, %v1286_v43 }
 0x1a2   : > { %v5608_v61 = vmax.f32 %v1318_v49, %v5937_v21  ;;  %v4698_v21 = vpack.c.bf16 %v1940_v45, %v1939_v34 }
 0x1a3   : > { %v5611_v3 = vmax.f32 %v1317_v51, %v5938_v18  ;;  %v4289_v33 = vpop.f32.mrb[78].mxu1 }
 0x1a4   : > { %v1320_v56 = vmax.f32 %v1157_v30, %v4289_v33  ;;  %v1296_v10 = vpop.f32.mrb[79].mxu1  ;;  %v1942_v33 = vld [vmem:[#allocation3 + $0xb8] sm:$0xff] }
 0x1a5   : > { %v1319_v58 = vmax.f32 %v1156_v17, %v1296_v10 }
 0x1a6   : > { %v5614_v37 = vmax.f32 %v1320_v56, %v5939_v22 }
 0x1a7   : > { %v5617_v63 = vmax.f32 %v1319_v58, %v5940_v19  ;;  %v4324_v9 = vpop.f32.mrb[80].mxu1 }
 0x1a8   : > { %v1632_v60 = vmax.f32 %v1469_v16, %v4324_v9  ;;  %v1552_v42 = vpop.f32.mrb[81].mxu1 }
 0x1a9   : > { %v1631_v27 = vmax.f32 %v1468_v31, %v1552_v42 }
 0x1aa   : > { %v5625_v6 = vadd.f32 %v5622_v1, %v1632_v60 }
 0x1ab   : > { %v5628_v44 = vadd.f32 %v5622_v1, %v1631_v27  ;;  %v4327_v8 = vpop.f32.mrb[82].mxu1 }
 0x1ac   : > { %v1671_v30 = vmax.f32 %v5625_v6, 0.0  ;;  %v1634_v17 = vmax.f32 %v1471_v52, %v4327_v8  ;;  %v1562_v35 = vpop.f32.mrb[83].mxu1  ;;  %v2332_v6 = vld [vmem:[#allocation3 + $0x1c8] sm:$0xff] }
 0x1ad   : > { %v1670_v13 = vmax.f32 %v5628_v44, 0.0  ;;  %v1633_v50 = vmax.f32 %v1470_v59, %v1562_v35 }
 0x1ae   : > { %1703 = vst [vmem:[#allocation2 + $0xa] sm:$0xff] %v1671_v30  ;;  %v5635_v15 = vadd.f32 %v5622_v1, %v1634_v17  ;;  %v1944_v17 = vld [vmem:[#allocation3 + $0xc8] sm:$0xff] }
 0x1af   : > { %1702 = vst [vmem:[#allocation2 + $0x2] sm:$0xff] %v1670_v13  ;;  %v5640_v16 = vadd.f32 %v5622_v1, %v1633_v50  ;;  %v4330_v31 = vpop.f32.mrb[84].mxu1 }
 0x1b0   : > { %v1673_v2 = vmax.f32 %v5635_v15, 0.0  ;;  %v1636_v20 = vmax.f32 %v1473_v26, %v4330_v31  ;;  %v1572_v53 = vpop.f32.mrb[85].mxu1  ;;  %v2334_v15 = vld [vmem:[#allocation3 + $0x1d8] sm:$0xff] }
 0x1b1   : > { %v1672_v23 = vmax.f32 %v5640_v16, 0.0  ;;  %v1635_v52 = vmax.f32 %v1472_v48, %v1572_v53  ;;  %v2333_v16 = vld [vmem:[#allocation3 + $0x1d0] sm:$0xff] }
 0x1b2   : > { %1705 = vst [vmem:[#allocation2 + $0x22] sm:$0xff] %v1673_v2  ;;  %v5647_v59 = vadd.f32 %v5622_v1, %v1636_v20 }
 0x1b3   : > { %1704 = vst [vmem:[#allocation2 + $0x1a] sm:$0xff] %v1672_v23  ;;  %v5652_v46 = vadd.f32 %v5622_v1, %v1635_v52  ;;  %v4333_v29 = vpop.f32.mrb[86].mxu1 }
 0x1b4   : > { %v1675_v26 = vmax.f32 %v5647_v59, 0.0  ;;  %v1638_v41 = vmax.f32 %v5590_v55, %v4333_v29  ;;  %v1582_v48 = vpop.f32.mrb[87].mxu1  ;;  %v2336_v59 = vld [vmem:[#allocation3 + $0x1e8] sm:$0xff] }
 0x1b5   : > { %v1674_v39 = vmax.f32 %v5652_v46, 0.0  ;;  %v1637_v0 = vmax.f32 %v5593_v57, %v1582_v48  ;;  %v1946_v48 = vld [vmem:[#allocation3 + $0xd8] sm:$0xff] }
 0x1b6   : > { %1707 = vst [vmem:[#allocation2 + $0x3a] sm:$0xff] %v1675_v26  ;;  %v5661_v54 = vadd.f32 %v5622_v1, %v1638_v41  ;;  %v1725_v4 = vld [vmem:[#allocation2] sm:$0xff]  ;;  %v1726_v11 = vld [vmem:[#allocation2 + $0x8] sm:$0xff] }
 0x1b7   : > { %1706 = vst [vmem:[#allocation2 + $0x32] sm:$0xff] %v1674_v39  ;;  %v5666_v5 = vadd.f32 %v5622_v1, %v1637_v0  ;;  %v4336_v55 = vpop.f32.mrb[88].mxu1  ;;  %4378 = vmatprep.mubr.f32.mxu0 %v1725_v4 }
 0x1b8   : > { %v1677_v57 = vmax.f32 %v5661_v54, 0.0  ;;  %v1640_v28 = vmax.f32 %v5596_v7, %v4336_v55  ;;  %v1592_v47 = vpop.f32.mrb[89].mxu1  ;;  %4379 = vmatmul.mubr.f32.vlgmr.msra.gmra.mrb[32].mxu0 %v1726_v11 }
 0x1b9   : > { %v1676_v14 = vmax.f32 %v5666_v5, 0.0  ;;  %v1639_v40 = vmax.f32 %v5599_v25, %v1592_v47  ;;  %4693 = vmatpush3.bf16.msra.mxu0 %v5941_v12  ;;  %v1941_v25 = vld [vmem:[#allocation3 + $0xb0] sm:$0xff]  ;;  %v2517_v5 = vld [vmem:[#allocation3 + $0x200] sm:$0xff] }
 0x1ba   : > { %1709 = vst [vmem:[#allocation2 + $0x52] sm:$0xff] %v1677_v57  ;;  %v5676_v49 = vadd.f32 %v5622_v1, %v1640_v28  ;;  %v1727_v43 = vld [vmem:[#allocation2 + $0x18] sm:$0xff]  ;;  %v1728_v51 = vld [vmem:[#allocation2 + $0x20] sm:$0xff]  ;;  %4695 = vmatprep.subr.bf16.mxu0 %v4694_v24  ;;  %v4702_v27 = vpack.c.bf16 %v1942_v33, %v1941_v25 }
 0x1bb   : > { %1708 = vst [vmem:[#allocation2 + $0x4a] sm:$0xff] %v1676_v14  ;;  %v5681_v7 = vadd.f32 %v5622_v1, %v1639_v40  ;;  %v4339_v18 = vpop.f32.mrb[90].mxu1  ;;  %4381 = vmatprep.mubr.f32.mxu0 %v1727_v43  ;;  %v1947_v40 = vld [vmem:[#allocation3 + $0xe0] sm:$0xff]  ;;  %v1950_v25 = vld [vmem:[#allocation3 + $0xf8] sm:$0xff] }
 0x1bc   : > { %v1679_v56 = vmax.f32 %v5676_v49, 0.0  ;;  %v1642_v10 = vmax.f32 %v5602_v36, %v4339_v18  ;;  %v1602_v58 = vpop.f32.mrb[91].mxu1  ;;  %4382 = vmatmul.mubr.f32.gmra.mrb[34].mxu0 %v1728_v51  ;;  %v2519_v49 = vld [vmem:[#allocation3 + $0x210] sm:$0xff] }
 0x1bd   : > { %v1678_v22 = vmax.f32 %v5681_v7, 0.0  ;;  %v1641_v19 = vmax.f32 %v5605_v38, %v1602_v58  ;;  %4697 = vmatpush3.bf16.msra.mxu0 %v4694_v24  ;;  %v1943_v38 = vld [vmem:[#allocation3 + $0xc0] sm:$0xff]  ;;  %v2520_v7 = vld [vmem:[#allocation3 + $0x218] sm:$0xff] }
 0x1be   : > { %1711 = vst [vmem:[#allocation2 + $0x6a] sm:$0xff] %v1679_v56  ;;  %v5690_v9 = vadd.f32 %v5622_v1, %v1642_v10  ;;  %v1729_v60 = vld [vmem:[#allocation2 + $0x30] sm:$0xff]  ;;  %v1730_v42 = vld [vmem:[#allocation2 + $0x38] sm:$0xff]  ;;  %4699 = vmatprep.subr.bf16.mxu0 %v4698_v21  ;;  %v4706_v32 = vpack.c.bf16 %v1944_v17, %v1943_v38 }
 0x1bf   : > { %1710 = vst [vmem:[#allocation2 + $0x62] sm:$0xff] %v1678_v22  ;;  %v5695_v36 = vadd.f32 %v5622_v1, %v1641_v19  ;;  %v4342_v8 = vpop.f32.mrb[92].mxu1  ;;  %4384 = vmatprep.mubr.f32.mxu0 %v1729_v60  ;;  %v2129_v19 = vld [vmem:[#allocation3 + $0x100] sm:$0xff]  ;;  %v2130_v60 = vld [vmem:[#allocation3 + $0x108] sm:$0xff]  ;;  %v2131_v38 = vld [vmem:[#allocation3 + $0x110] sm:$0xff] }
 0x1c0   : > { %v1681_v35 = vmax.f32 %v5690_v9, 0.0  ;;  %v1644_v50 = vmax.f32 %v5608_v61, %v4342_v8  ;;  %v1612_v31 = vpop.f32.mrb[93].mxu1  ;;  %4385 = vmatmul.mubr.f32.gmra.mrb[36].mxu0 %v1730_v42  ;;  %v4722_v8 = vpack.c.bf16 %v2130_v60, %v2129_v19  ;;  %v2132_v17 = vld [vmem:[#allocation3 + $0x118] sm:$0xff]  ;;  %v2307_v9 = vld [vmem:[#allocation2 + $0xb] sm:$0xff] }
 0x1c1   : > { %v1680_v20 = vmax.f32 %v5695_v36, 0.0  ;;  %v1643_v53 = vmax.f32 %v5611_v3, %v1612_v31  ;;  %4701 = vmatpush3.bf16.msra.mxu0 %v4698_v21  ;;  %v1945_v3 = vld [vmem:[#allocation3 + $0xd0] sm:$0xff]  ;;  %v4726_v31 = vpack.c.bf16 %v2132_v17, %v2131_v38  ;;  %v2521_v36 = vld [vmem:[#allocation3 + $0x220] sm:$0xff] }
 0x1c2   : > { %1713 = vst [vmem:[#allocation2 + $0x82] sm:$0xff] %v1681_v35  ;;  %v5704_v52 = vadd.f32 %v5622_v1, %v1644_v50  ;;  %v1731_v29 = vld [vmem:[#allocation2 + $0x48] sm:$0xff]  ;;  %v1732_v62 = vld [vmem:[#allocation2 + $0x50] sm:$0xff]  ;;  %4703 = vmatprep.subr.bf16.mxu0 %v4702_v27  ;;  %v4710_v47 = vpack.c.bf16 %v1946_v48, %v1945_v3 }
 0x1c3   : > { %1712 = vst [vmem:[#allocation2 + $0x7a] sm:$0xff] %v1680_v20  ;;  %v5709_v61 = vadd.f32 %v5622_v1, %v1643_v53  ;;  %v4345_v41 = vpop.f32.mrb[94].mxu1  ;;  %4387 = vmatprep.mubr.f32.mxu0 %v1731_v29  ;;  %v1918_v50 = vld [vmem:[#allocation2 + $0x1] sm:$0xff]  ;;  %v1919_v53 = vld [vmem:[#allocation2 + $0x9] sm:$0xff] }
 0x1c4   : > { %v1683_v0 = vmax.f32 %v5704_v52, 0.0  ;;  %v1646_v4 = vmax.f32 %v5614_v37, %v4345_v41  ;;  %v1622_v11 = vpop.f32.mrb[95].mxu1  ;;  %4388 = vmatmul.mubr.f32.gmra.mrb[38].mxu0 %v1732_v62  ;;  %v2133_v29 = vld [vmem:[#allocation3 + $0x120] sm:$0xff]  ;;  %v2134_v62 = vld [vmem:[#allocation3 + $0x128] sm:$0xff]  ;;  %v2135_v48 = vld [vmem:[#allocation3 + $0x130] sm:$0xff] }
 0x1c5   : > { %v1682_v24 = vmax.f32 %v5709_v61, 0.0  ;;  %v1645_v55 = vmax.f32 %v5617_v63, %v1622_v11  ;;  %4705 = vmatpush3.bf16.msra.mxu0 %v4702_v27  ;;  %v1948_v63 = vld [vmem:[#allocation3 + $0xe8] sm:$0xff]  ;;  %v4730_v41 = vpack.c.bf16 %v2134_v62, %v2133_v29  ;;  %v1922_v11 = vld [vmem:[#allocation2 + $0x31] sm:$0xff] }
 0x1c6   : > { %1715 = vst [vmem:[#allocation2 + $0x9a] sm:$0xff] %v1683_v0  ;;  %v5718_v34 = vadd.f32 %v5622_v1, %v1646_v4  ;;  %v1733_v45 = vld [vmem:[#allocation2 + $0x60] sm:$0xff]  ;;  %v1734_v28 = vld [vmem:[#allocation2 + $0x68] sm:$0xff]  ;;  %4707 = vmatprep.subr.bf16.mxu0 %v4706_v32  ;;  %v4714_v18 = vpack.c.bf16 %v1948_v63, %v1947_v40  ;;  %v2136_v4 = vld [vmem:[#allocation3 + $0x138] sm:$0xff] }
 0x1c7   : > { %1714 = vst [vmem:[#allocation2 + $0x92] sm:$0xff] %v1682_v24  ;;  %v5723_v37 = vadd.f32 %v5622_v1, %v1645_v55  ;;  %4390 = vmatprep.mubr.f32.mxu0 %v1733_v45  ;;  %v1949_v1 = vld [vmem:[#allocation3 + $0xf0] sm:$0xff]  ;;  %v1921_v3 = vld [vmem:[#allocation2 + $0x21] sm:$0xff]  ;;  %v4734_v55 = vpack.c.bf16 %v2136_v4, %v2135_v48  ;;  %v1923_v45 = vld [vmem:[#allocation2 + $0x39] sm:$0xff] }
 0x1c8   : > { %v1685_v12 = vmax.f32 %v5718_v34, 0.0  ;;  %4391 = vmatmul.mubr.f32.gmra.mrb[40].mxu0 %v1734_v28  ;;  %v4718_v58 = vpack.c.bf16 %v1950_v25, %v1949_v1  ;;  %v2137_v28 = vld [vmem:[#allocation3 + $0x140] sm:$0xff]  ;;  %v1924_v40 = vld [vmem:[#allocation2 + $0x49] sm:$0xff]  ;;  %v2310_v34 = vld [vmem:[#allocation2 + $0x33] sm:$0xff] }
 0x1c9   : > { %v1684_v43 = vmax.f32 %v5723_v37, 0.0  ;;  %4709 = vmatpush3.bf16.msra.mxu0 %v4706_v32  ;;  %v1920_v32 = vld [vmem:[#allocation2 + $0x19] sm:$0xff]  ;;  %v1926_v1 = vld [vmem:[#allocation2 + $0x61] sm:$0xff] }
 0x1ca   : > { %1717 = vst [vmem:[#allocation2 + $0xb2] sm:$0xff] %v1685_v12  ;;  %v1735_v51 = vld [vmem:[#allocation2 + $0x78] sm:$0xff]  ;;  %v1736_v21 = vld [vmem:[#allocation2 + $0x80] sm:$0xff]  ;;  %4711 = vmatprep.subr.bf16.mxu0 %v4710_v47 }
 0x1cb   : > { %1716 = vst [vmem:[#allocation2 + $0xaa] sm:$0xff] %v1684_v43  ;;  %4393 = vmatprep.mubr.f32.mxu0 %v1735_v51  ;;  %v1925_v51 = vld [vmem:[#allocation2 + $0x51] sm:$0xff]  ;;  %v1928_v19 = vld [vmem:[#allocation2 + $0x79] sm:$0xff]  ;;  %v2309_v61 = vld [vmem:[#allocation2 + $0x23] sm:$0xff] }
 0x1cc   : > { %4394 = vmatmul.mubr.f32.gmra.mrb[42].mxu0 %v1736_v21  ;;  %v2139_v21 = vld [vmem:[#allocation3 + $0x150] sm:$0xff]  ;;  %v2327_v4 = vld [vmem:[#allocation3 + $0x1a0] sm:$0xff] }
 0x1cd   : > { %4713 = vmatpush3.bf16.msra.mxu0 %v4710_v47  ;;  %v2138_v47 = vld [vmem:[#allocation3 + $0x148] sm:$0xff] }
 0x1ce   : > { %v1737_v33 = vld [vmem:[#allocation2 + $0x90] sm:$0xff]  ;;  %v1738_v10 = vld [vmem:[#allocation2 + $0x98] sm:$0xff]  ;;  %4715 = vmatprep.subr.bf16.mxu0 %v4714_v18  ;;  %v4738_v63 = vpack.c.bf16 %v2138_v47, %v2137_v28  ;;  %v2526_v47 = vld [vmem:[#allocation3 + $0x248] sm:$0xff] }
 0x1cf   : > { %4396 = vmatprep.mubr.f32.mxu0 %v1737_v33  ;;  %v1927_v33 = vld [vmem:[#allocation2 + $0x69] sm:$0xff]  ;;  %v1930_v38 = vld [vmem:[#allocation2 + $0x91] sm:$0xff] }
 0x1d0   : > { %4397 = vmatmul.mubr.f32.gmra.mrb[44].mxu0 %v1738_v10  ;;  %v2141_v10 = vld [vmem:[#allocation3 + $0x160] sm:$0xff]  ;;  %v2330_v28 = vld [vmem:[#allocation3 + $0x1b8] sm:$0xff] }
 0x1d1   : > { %4717 = vmatpush3.bf16.msra.mxu0 %v4714_v18  ;;  %v2140_v18 = vld [vmem:[#allocation3 + $0x158] sm:$0xff] }
 0x1d2   : > { %v1739_v42 = vld [vmem:[#allocation2 + $0xa8] sm:$0xff]  ;;  %v1740_v27 = vld [vmem:[#allocation2 + $0xb0] sm:$0xff]  ;;  %4719 = vmatprep.subr.bf16.mxu0 %v4718_v58  ;;  %v4742_v25 = vpack.c.bf16 %v2140_v18, %v2139_v21  ;;  %v2528_v18 = vld [vmem:[#allocation3 + $0x258] sm:$0xff] }
 0x1d3   : > { %4399 = vmatprep.mubr.f32.mxu0 %v1739_v42  ;;  %v1929_v42 = vld [vmem:[#allocation2 + $0x81] sm:$0xff]  ;;  %v1932_v29 = vld [vmem:[#allocation2 + $0xa9] sm:$0xff] }
 0x1d4   : > { %4400 = vmatmul.mubr.f32.gmra.mrb[46].mxu0 %v1740_v27  ;;  %v2143_v27 = vld [vmem:[#allocation3 + $0x170] sm:$0xff] }
 0x1d5   : > { %4721 = vmatpush3.bf16.msra.mxu0 %v4718_v58  ;;  %4434 = vmatprep.mubr.f32.mxu0 %v1918_v50  ;;  %v2142_v58 = vld [vmem:[#allocation3 + $0x168] sm:$0xff]  ;;  %v1931_v50 = vld [vmem:[#allocation2 + $0x99] sm:$0xff]  ;;  %v2527_v21 = vld [vmem:[#allocation3 + $0x250] sm:$0xff] }
 0x1d6   : > { %4723 = vmatprep.subr.bf16.mxu0 %v4722_v8  ;;  %v4746_v60 = vpack.c.bf16 %v2142_v58, %v2141_v10  ;;  %v2529_v10 = vld [vmem:[#allocation3 + $0x260] sm:$0xff]  ;;  %v2530_v58 = vld [vmem:[#allocation3 + $0x268] sm:$0xff] }
 0x1d8   : > { %4435 = vmatmul.mubr.f32.vlgmr.msra.gmra.mrb[32].mxu0 %v1919_v53  ;;  %v2324_v53 = vld [vmem:[#allocation3 + $0x188] sm:$0xff] }
 0x1d9   : > { %4437 = vmatprep.mubr.f32.mxu0 %v1920_v32  ;;  %4725 = vmatpush3.bf16.msra.mxu0 %v4722_v8  ;;  %v2144_v8 = vld [vmem:[#allocation3 + $0x178] sm:$0xff] }
 0x1da   : > { %4727 = vmatprep.subr.bf16.mxu0 %v4726_v31  ;;  %v4750_v17 = vpack.c.bf16 %v2144_v8, %v2143_v27  ;;  %v1933_v32 = vld [vmem:[#allocation2 + $0xb1] sm:$0xff] }
 0x1db   : > { %v2531_v27 = vld [vmem:[#allocation3 + $0x270] sm:$0xff]  ;;  %v2532_v8 = vld [vmem:[#allocation3 + $0x278] sm:$0xff] }
 0x1dc   : > { %4438 = vmatmul.mubr.f32.gmra.mrb[34].mxu0 %v1921_v3  ;;  %v2326_v3 = vld [vmem:[#allocation3 + $0x198] sm:$0xff] }
 0x1dd   : > { %4440 = vmatprep.mubr.f32.mxu0 %v1922_v11  ;;  %4729 = vmatpush3.bf16.msra.mxu0 %v4726_v31  ;;  %v2323_v31 = vld [vmem:[#allocation3 + $0x180] sm:$0xff]  ;;  %v2328_v11 = vld [vmem:[#allocation3 + $0x1a8] sm:$0xff] }
 0x1de   : > { %4731 = vmatprep.subr.bf16.mxu0 %v4730_v41  ;;  %v4754_v62 = vpack.c.bf16 %v2324_v53, %v2323_v31  ;;  %v2320_v31 = vld [vmem:[#allocation2 + $0xab] sm:$0xff]  ;;  %v2321_v53 = vld [vmem:[#allocation2 + $0xb3] sm:$0xff] }
 0x1e0   : > { %4441 = vmatmul.mubr.f32.gmra.mrb[36].mxu0 %v1923_v45  ;;  %v2329_v45 = vld [vmem:[#allocation3 + $0x1b0] sm:$0xff] }
 0x1e1   : > { %4443 = vmatprep.mubr.f32.mxu0 %v1924_v40  ;;  %4733 = vmatpush3.bf16.msra.mxu0 %v4730_v41  ;;  %v2325_v41 = vld [vmem:[#allocation3 + $0x190] sm:$0xff]  ;;  %v4766_v44 = vpack.c.bf16 %v2330_v28, %v2329_v45  ;;  %v2510_v28 = vld [vmem:[#allocation2 + $0x7c] sm:$0xff] }
 0x1e2   : > { %4735 = vmatprep.subr.bf16.mxu0 %v4734_v55  ;;  %v4758_v48 = vpack.c.bf16 %v2326_v3, %v2325_v41  ;;  %v2312_v40 = vld [vmem:[#allocation2 + $0x4b] sm:$0xff]  ;;  %v2504_v3 = vld [vmem:[#allocation2 + $0x34] sm:$0xff] }
 0x1e3   : > { %v2503_v41 = vld [vmem:[#allocation2 + $0x24] sm:$0xff]  ;;  %v2509_v45 = vld [vmem:[#allocation2 + $0x6c] sm:$0xff] }
 0x1e4   : > { %4444 = vmatmul.mubr.f32.gmra.mrb[38].mxu0 %v1925_v51  ;;  %v2313_v51 = vld [vmem:[#allocation2 + $0x53] sm:$0xff] }
 0x1e5   : > { %4446 = vmatprep.mubr.f32.mxu0 %v1926_v1  ;;  %4737 = vmatpush3.bf16.msra.mxu0 %v4734_v55  ;;  %v4762_v55 = vpack.c.bf16 %v2328_v11, %v2327_v4  ;;  %v2314_v1 = vld [vmem:[#allocation2 + $0x63] sm:$0xff]  ;;  %v2506_v4 = vld [vmem:[#allocation2 + $0x4c] sm:$0xff]  ;;  %v2507_v11 = vld [vmem:[#allocation2 + $0x54] sm:$0xff] }
 0x1e6   : > { %4739 = vmatprep.subr.bf16.mxu0 %v4738_v63 }
 0x1e8   : > { %4447 = vmatmul.mubr.f32.gmra.mrb[40].mxu0 %v1927_v33  ;;  %v2315_v33 = vld [vmem:[#allocation2 + $0x6b] sm:$0xff] }
 0x1e9   : > { %4449 = vmatprep.mubr.f32.mxu0 %v1928_v19  ;;  %4741 = vmatpush3.bf16.msra.mxu0 %v4738_v63  ;;  %v2316_v19 = vld [vmem:[#allocation2 + $0x7b] sm:$0xff] }
 0x1ea   : > { %4743 = vmatprep.subr.bf16.mxu0 %v4742_v25 }
 0x1ec   : > { %4450 = vmatmul.mubr.f32.gmra.mrb[42].mxu0 %v1929_v42  ;;  %v2317_v42 = vld [vmem:[#allocation2 + $0x83] sm:$0xff] }
 0x1ed   : > { %4452 = vmatprep.mubr.f32.mxu0 %v1930_v38  ;;  %4745 = vmatpush3.bf16.msra.mxu0 %v4742_v25  ;;  %v4806_v25 = vpack.c.bf16 %v2528_v18, %v2527_v21  ;;  %v2318_v38 = vld [vmem:[#allocation2 + $0x93] sm:$0xff] }
 0x1ee   : > { %4747 = vmatprep.subr.bf16.mxu0 %v4746_v60 }
 0x1f0   : > { %4453 = vmatmul.mubr.f32.gmra.mrb[44].mxu0 %v1931_v50  ;;  %v2319_v50 = vld [vmem:[#allocation2 + $0x9b] sm:$0xff] }
 0x1f1   : > { %4455 = vmatprep.mubr.f32.mxu0 %v1932_v29  ;;  %4749 = vmatpush3.bf16.msra.mxu0 %v4746_v60  ;;  %v4810_v60 = vpack.c.bf16 %v2530_v58, %v2529_v10  ;;  %v2500_v29 = vld [vmem:[#allocation2 + $0x4] sm:$0xff] }
 0x1f2   : > { %4751 = vmatprep.subr.bf16.mxu0 %v4750_v17 }
 0x1f4   : > { %4456 = vmatmul.mubr.f32.gmra.mrb[46].mxu0 %v1933_v32  ;;  %v2502_v32 = vld [vmem:[#allocation2 + $0x1c] sm:$0xff] }
 0x1f5   : > { %4753 = vmatpush3.bf16.msra.mxu0 %v4750_v17  ;;  %4490 = vmatprep.mubr.f32.mxu0 %v1670_v13  ;;  %v2331_v13 = vld [vmem:[#allocation3 + $0x1c0] sm:$0xff]  ;;  %v4814_v17 = vpack.c.bf16 %v2532_v8, %v2531_v27 }
 0x1f6   : > { %4755 = vmatprep.subr.bf16.mxu0 %v4754_v62 }
 0x1f8   : > { %4491 = vmatmul.mubr.f32.vlgmr.msra.gmra.mrb[32].mxu0 %v1671_v30  ;;  %v4770_v30 = vpack.c.bf16 %v2332_v6, %v2331_v13  ;;  %v2512_v13 = vld [vmem:[#allocation2 + $0x94] sm:$0xff]  ;;  %v2513_v6 = vld [vmem:[#allocation2 + $0x9c] sm:$0xff] }
 0x1f9   : > { %4493 = vmatprep.mubr.f32.mxu0 %v1672_v23  ;;  %4757 = vmatpush3.bf16.msra.mxu0 %v4754_v62  ;;  %v2335_v23 = vld [vmem:[#allocation3 + $0x1e0] sm:$0xff]  ;;  %v2501_v62 = vld [vmem:[#allocation2 + $0xc] sm:$0xff] }
 0x1fa   : > { %4759 = vmatprep.subr.bf16.mxu0 %v4758_v48  ;;  %v4778_v46 = vpack.c.bf16 %v2336_v59, %v2335_v23  ;;  %v2713_v23 = vld [vmem:[%s5917_s5 + $0x18] sm:$0xff]  ;;  %v5775_v59 = vld [vmem:[%s5916_s4] ss:$0 sm:$0xff] }
 0x1fc   : > { %4494 = vmatmul.mubr.f32.gmra.mrb[34].mxu0 %v1673_v2  ;;  %v4774_v2 = vpack.c.bf16 %v2334_v15, %v2333_v16  ;;  %v2515_v16 = vld [vmem:[#allocation2 + $0xb4] sm:$0xff]  ;;  %v2711_v15 = vld [vmem:[%s5917_s5 + $0x8] sm:$0xff] }
 0x1fd   : > { %4496 = vmatprep.mubr.f32.mxu0 %v1674_v39  ;;  %4761 = vmatpush3.bf16.msra.mxu0 %v4758_v48  ;;  %v2338_v39 = vld [vmem:[#allocation3 + $0x1f8] sm:$0xff] }
 0x1fe   : > { %4763 = vmatprep.subr.bf16.mxu0 %v4762_v55  ;;  %v2505_v48 = vld [vmem:[#allocation2 + $0x3c] sm:$0xff]  ;;  %3037 = vmatprep.subr.mxu1 %v2711_v15 }
 0x200   : > { %4497 = vmatmul.mubr.f32.gmra.mrb[36].mxu0 %v1675_v26  ;;  %v2337_v26 = vld [vmem:[#allocation3 + $0x1f0] sm:$0xff] }
 0x201   : > { %4499 = vmatprep.mubr.f32.mxu0 %v1676_v14  ;;  %4765 = vmatpush3.bf16.msra.mxu0 %v4762_v55  ;;  %v4782_v54 = vpack.c.bf16 %v2338_v39, %v2337_v26  ;;  %v2508_v55 = vld [vmem:[#allocation2 + $0x64] sm:$0xff] }
 0x202   : > { %4767 = vmatprep.subr.bf16.mxu0 %v4766_v44 }
 0x204   : > { %4500 = vmatmul.mubr.f32.gmra.mrb[38].mxu0 %v1677_v57  ;;  %v2518_v57 = vld [vmem:[#allocation3 + $0x208] sm:$0xff] }
 0x205   : > { %4502 = vmatprep.mubr.f32.mxu0 %v1678_v22  ;;  %4769 = vmatpush3.bf16.msra.mxu0 %v4766_v44  ;;  %v4786_v14 = vpack.c.bf16 %v2518_v57, %v2517_v5  ;;  %v4790_v22 = vpack.c.bf16 %v2520_v7, %v2519_v49  ;;  %v2511_v44 = vld [vmem:[#allocation2 + $0x84] sm:$0xff]  ;;  %v4984_v49 = vmov 1966171168  }
 0x206   : > { %4771 = vmatprep.subr.bf16.mxu0 %v4770_v30  ;;  %v2758_v7 = vunpack.c.l.s4 %v4984_v49 }
 0x208   : > { %4503 = vmatmul.mubr.f32.gmra.mrb[40].mxu0 %v1679_v56  ;;  %v2306_v56 = vld [vmem:[#allocation2 + $0x3] sm:$0xff] }
 0x209   : > { %4505 = vmatprep.mubr.f32.mxu0 %v1680_v20  ;;  %4773 = vmatpush3.bf16.msra.mxu0 %v4770_v30  ;;  %v2308_v20 = vld [vmem:[#allocation2 + $0x1b] sm:$0xff]  ;;  %v2514_v30 = vld [vmem:[#allocation2 + $0xac] sm:$0xff] }
 0x20a   : > { %4775 = vmatprep.subr.bf16.mxu0 %v4774_v2 }
 0x20c   : > { %4506 = vmatmul.mubr.f32.gmra.mrb[42].mxu0 %v1681_v35  ;;  %v2522_v35 = vld [vmem:[#allocation3 + $0x228] sm:$0xff] }
 0x20d   : > { %4508 = vmatprep.mubr.f32.mxu0 %v1682_v24  ;;  %4777 = vmatpush3.bf16.msra.mxu0 %v4774_v2  ;;  %v4794_v52 = vpack.c.bf16 %v2522_v35, %v2521_v36  ;;  %v2524_v24 = vld [vmem:[#allocation3 + $0x238] sm:$0xff]  ;;  %v2710_v2 = vld [vmem:[%s5917_s5] sm:$0xff] }
 0x20e   : > { %4779 = vmatprep.subr.bf16.mxu0 %v4778_v46  ;;  %3038 = vmatpush1.xpose.msra.mxu1 %v2710_v2 }
 0x20f   : > { %3107 = vmatprep.subr.mxu1 %v2713_v23 }
 0x210   : > { %4509 = vmatmul.mubr.f32.gmra.mrb[44].mxu0 %v1683_v0  ;;  %v2523_v0 = vld [vmem:[#allocation3 + $0x230] sm:$0xff] }
 0x211   : > { %4511 = vmatprep.mubr.f32.mxu0 %v1684_v43  ;;  %4781 = vmatpush3.bf16.msra.mxu0 %v4778_v46  ;;  %v4798_v37 = vpack.c.bf16 %v2524_v24, %v2523_v0  ;;  %v2525_v43 = vld [vmem:[#allocation3 + $0x240] sm:$0xff] }
 0x212   : > { %4783 = vmatprep.subr.bf16.mxu0 %v4782_v54  ;;  %v4802_v63 = vpack.c.bf16 %v2526_v47, %v2525_v43 }
 0x214   : > { %4512 = vmatmul.mubr.f32.gmra.mrb[46].mxu0 %v1685_v12  ;;  %v2311_v12 = vld [vmem:[#allocation2 + $0x3b] sm:$0xff] }
 0x215   : > { %4785 = vmatpush3.bf16.msra.mxu0 %v4782_v54  ;;  %4546 = vmatprep.mubr.f32.mxu0 %v2306_v56  ;;  %v2760_v56 = vlaneseq }
 0x216   : > { %4787 = vmatprep.subr.bf16.mxu0 %v4786_v14 }
 0x218   : > { %4547 = vmatmul.mubr.f32.vlgmr.msra.gmra.mrb[32].mxu0 %v2307_v9 }
 0x219   : > { %4549 = vmatprep.mubr.f32.mxu0 %v2308_v20  ;;  %4789 = vmatpush3.bf16.msra.mxu0 %v4786_v14 }
 0x21a   : > { %4791 = vmatprep.subr.bf16.mxu0 %v4790_v22 }
 0x21c   : > { %4550 = vmatmul.mubr.f32.gmra.mrb[34].mxu0 %v2309_v61 }
 0x21d   : > { %4552 = vmatprep.mubr.f32.mxu0 %v2310_v34  ;;  %4793 = vmatpush3.bf16.msra.mxu0 %v4790_v22  ;;  %v2759_v34 = vunpack.c.0.s8 %v2758_v7 }
 0x21e   : > { %4795 = vmatprep.subr.bf16.mxu0 %v4794_v52 }
 0x220   : > { %4553 = vmatmul.mubr.f32.gmra.mrb[36].mxu0 %v2311_v12 }
 0x221   : > { %4555 = vmatprep.mubr.f32.mxu0 %v2312_v40  ;;  %4797 = vmatpush3.bf16.msra.mxu0 %v4794_v52 }
 0x222   : > { %4799 = vmatprep.subr.bf16.mxu0 %v4798_v37 }
 0x224   : > { %4556 = vmatmul.mubr.f32.gmra.mrb[38].mxu0 %v2313_v51 }
 0x225   : > { %4558 = vmatprep.mubr.f32.mxu0 %v2314_v1  ;;  %4801 = vmatpush3.bf16.msra.mxu0 %v4798_v37  ;;  %v2761_v37 = vshrl.u32 %v2760_v56, 7 }
 0x226   : > { %4803 = vmatprep.subr.bf16.mxu0 %v4802_v63 }
 0x227   : > { %v5784_v18 = vsub.s32 %v2759_v34, %v2761_v37 }
 0x228   : > { %4559 = vmatmul.mubr.f32.gmra.mrb[40].mxu0 %v2315_v33 }
 0x229   : > { %4561 = vmatprep.mubr.f32.mxu0 %v2316_v19  ;;  %4805 = vmatpush3.bf16.msra.mxu0 %v4802_v63 }
 0x22a   : > { %4807 = vmatprep.subr.bf16.mxu0 %v4806_v25 }
 0x22c   : > { %4562 = vmatmul.mubr.f32.gmra.mrb[42].mxu0 %v2317_v42 }
 0x22d   : > { %4564 = vmatprep.mubr.f32.mxu0 %v2318_v38  ;;  %4809 = vmatpush3.bf16.msra.mxu0 %v4806_v25 }
 0x22e   : > { %4811 = vmatprep.subr.bf16.mxu0 %v4810_v60 }
 0x230   : > { %4565 = vmatmul.mubr.f32.gmra.mrb[44].mxu0 %v2319_v50 }
 0x231   : > { %4567 = vmatprep.mubr.f32.mxu0 %v2320_v31  ;;  %4813 = vmatpush3.bf16.msra.mxu0 %v4810_v60 }
 0x232   : > { %4815 = vmatprep.subr.bf16.mxu0 %v4814_v17 }
 0x234   : > { %4568 = vmatmul.mubr.f32.gmra.mrb[46].mxu0 %v2321_v53 }
 0x235   : > { %4817 = vmatpush3.bf16.msra.mxu0 %v4814_v17  ;;  %4602 = vmatprep.mubr.f32.mxu0 %v2500_v29 }
 0x238   : > { %4603 = vmatmul.mubr.f32.vlgmr.msra.gmra.mrb[32].mxu0 %v2501_v62 }
 0x239   : > { %4605 = vmatprep.mubr.f32.mxu0 %v2502_v32 }
 0x23c   : > { %4606 = vmatmul.mubr.f32.gmra.mrb[34].mxu0 %v2503_v41 }
 0x23d   : > { %4608 = vmatprep.mubr.f32.mxu0 %v2504_v3 }
 0x240   : > { %4609 = vmatmul.mubr.f32.gmra.mrb[36].mxu0 %v2505_v48 }
 0x241   : > { %4611 = vmatprep.mubr.f32.mxu0 %v2506_v4 }
 0x244   : > { %4612 = vmatmul.mubr.f32.gmra.mrb[38].mxu0 %v2507_v11 }
 0x245   : > { %4614 = vmatprep.mubr.f32.mxu0 %v2508_v55 }
 0x248   : > { %4615 = vmatmul.mubr.f32.gmra.mrb[40].mxu0 %v2509_v45 }
 0x249   : > { %4617 = vmatprep.mubr.f32.mxu0 %v2510_v28 }
 0x24c   : > { %4618 = vmatmul.mubr.f32.gmra.mrb[42].mxu0 %v2511_v44 }
 0x24d   : > { %4620 = vmatprep.mubr.f32.mxu0 %v2512_v13 }
 0x250   : > { %4621 = vmatmul.mubr.f32.gmra.mrb[44].mxu0 %v2513_v6 }
 0x251   : > { %4623 = vmatprep.mubr.f32.mxu0 %v2514_v30 }
 0x254   : > { %4624 = vmatmul.mubr.f32.gmra.mrb[46].mxu0 %v2515_v16 }
 0x30b   : > { %v4604_v46 = vpop.f32.mrb[32].mxu0 }
 0x30c   : > { %v2599_v26 = vpop.f32.mrb[33].mxu0  ;;  %v4818_v39 = vadd.f32 %v4604_v46, %v5775_v59 }
 0x30d   : > { %v4819_v54 = vadd.f32 %v5775_v59, %v2599_v26 }
 0x30e   : > { %v2695_v9 = vmax.f32 %v4818_v39, 0.0 }
 0x30f   : > { %v4607_v5 = vpop.f32.mrb[34].mxu0  ;;  %v2694_v35 = vmax.f32 %v4819_v54, 0.0 }
 0x310   : > { %v4820_v57 = vadd.f32 %v4607_v5, %v5775_v59  ;;  %v2609_v14 = vpop.f32.mrb[35].mxu0 }
 0x311   : > { %v4821_v22 = vadd.f32 %v5775_v59, %v2609_v14 }
 0x312   : > { %v2697_v36 = vmax.f32 %v4820_v57, 0.0 }
 0x313   : > { %v2696_v20 = vmax.f32 %v4821_v22, 0.0  ;;  %v4610_v52 = vpop.f32.mrb[36].mxu0 }
 0x314   : > { %v2885_v61 = vcombine.low %v2695_v9, %v2697_v36  ;;  %v2886_v0 = vcombine.high %v2695_v9, %v2697_v36  ;;  %v2619_v24 = vpop.f32.mrb[37].mxu0  ;;  %v4822_v47 = vadd.f32 %v4610_v52, %v5775_v59 }
 0x315   : > { %v2749_v12 = vcombine.low %v2694_v35, %v2696_v20  ;;  %v2750_v43 = vcombine.high %v2694_v35, %v2696_v20  ;;  %v4823_v40 = vadd.f32 %v5775_v59, %v2619_v24 }
 0x316   : > { %v2699_v25 = vmax.f32 %v4822_v47, 0.0  ;;  %v5788_v8 = vrot.slane %v2885_v61, %v5784_v18  ;;  %v5791_v38 = vrot.slane %v2886_v0, %v5784_v18 }
 0x317   : > { %v4613_v63 = vpop.f32.mrb[38].mxu0  ;;  %v2698_v10 = vmax.f32 %v4823_v40, 0.0  ;;  %v2763_v31 = vrot.slane %v2749_v12, %v5784_v18  ;;  %v2770_v53 = vrot.slane %v2750_v43, %v5784_v18 }
 0x318   : > { %v4824_v51 = vadd.f32 %v4613_v63, %v5775_v59  ;;  %v2629_v21 = vpop.f32.mrb[39].mxu0 }
 0x319   : > { %v4825_v1 = vadd.f32 %v5775_v59, %v2629_v21 }
 0x31a   : > { %v2701_v33 = vmax.f32 %v4824_v51, 0.0 }
 0x31b   : > { %v2700_v58 = vmax.f32 %v4825_v1, 0.0  ;;  %v4616_v19 = vpop.f32.mrb[40].mxu0 }
 0x31c   : > { %v2887_v60 = vcombine.low %v2699_v25, %v2701_v33  ;;  %v2888_v42 = vcombine.high %v2699_v25, %v2701_v33  ;;  %v2639_v27 = vpop.f32.mrb[41].mxu0  ;;  %v4826_v3 = vadd.f32 %v4616_v19, %v5775_v59 }
 0x31d   : > { %v2751_v17 = vcombine.low %v2698_v10, %v2700_v58  ;;  %v2752_v50 = vcombine.high %v2698_v10, %v2700_v58  ;;  %v4827_v48 = vadd.f32 %v5775_v59, %v2639_v27 }
 0x31e   : > { %v2913_v29 = vrot.slane %v2887_v60, %v5784_v18  ;;  %v2920_v62 = vrot.slane %v2888_v42, %v5784_v18  ;;  %v2703_v46 = vmax.f32 %v4826_v3, 0.0 }
 0x31f   : > { %v2777_v32 = vrot.slane %v2751_v17, %v5784_v18  ;;  %v2784_v41 = vrot.slane %v2752_v50, %v5784_v18  ;;  %v4619_v4 = vpop.f32.mrb[42].mxu0  ;;  %v2702_v26 = vmax.f32 %v4827_v48, 0.0 }
 0x320   : > { %v2949_v11 = vcombine.low %v5788_v8, %v2913_v29  ;;  %v2950_v55 = vcombine.high %v5788_v8, %v2913_v29  ;;  %v2951_v45 = vcombine.low %v5791_v38, %v2920_v62  ;;  %v2952_v28 = vcombine.high %v5791_v38, %v2920_v62  ;;  %v2649_v44 = vpop.f32.mrb[43].mxu0 }
 0x321   : > { %v2813_v13 = vcombine.low %v2763_v31, %v2777_v32  ;;  %v2814_v6 = vcombine.high %v2763_v31, %v2777_v32  ;;  %v2815_v30 = vcombine.low %v2770_v53, %v2784_v41  ;;  %v2816_v16 = vcombine.high %v2770_v53, %v2784_v41 }
 0x322   : > { %v4828_v15 = vadd.f32 %v4619_v4, %v5775_v59  ;;  %v4829_v2 = vadd.f32 %v5775_v59, %v2649_v44  ;;  %v5812_v34 = vrot.slane %v2949_v11, %v5784_v18  ;;  %v5815_v37 = vrot.slane %v2951_v45, %v5784_v18 }
 0x323   : > { %v4622_v23 = vpop.f32.mrb[44].mxu0  ;;  %v2827_v12 = vrot.slane %v2813_v13, %v5784_v18  ;;  %v5819_v43 = vrot.slane %v2815_v30, %v5784_v18  ;;  %v2841_v1 = vrot.slane %v2814_v6, %v5784_v18  ;;  %v2848_v25 = vrot.slane %v2816_v16, %v5784_v18 }
 0x324   : > { %v2705_v39 = vmax.f32 %v4828_v15, 0.0  ;;  %v2704_v54 = vmax.f32 %v4829_v2, 0.0  ;;  %v2659_v5 = vpop.f32.mrb[45].mxu0  ;;  %v4830_v56 = vadd.f32 %v4622_v23, %v5775_v59  ;;  %v5832_v27 = vrot.slane %v2950_v55, %v5784_v18 }
 0x325   : > { %v4831_v22 = vadd.f32 %v5775_v59, %v2659_v5  ;;  %v5835_v8 = vrot.slane %v2952_v28, %v5784_v18  ;;  %v2715_v5 = vld [vmem:[%s5917_s5 + $0x28] sm:$0xff] }
 0x326   : > { %v2889_v57 = vcombine.low %v2703_v46, %v2705_v39  ;;  %v2890_v14 = vcombine.high %v2703_v46, %v2705_v39  ;;  %v2753_v49 = vcombine.low %v2702_v26, %v2704_v54  ;;  %v2754_v7 = vcombine.high %v2702_v26, %v2704_v54  ;;  %v2712_v46 = vld [vmem:[%s5917_s5 + $0x10] sm:$0xff] }
 0x327   : > { %v4625_v9 = vpop.f32.mrb[46].mxu0  ;;  %v2707_v52 = vmax.f32 %v4830_v56, 0.0  ;;  %v2706_v61 = vmax.f32 %v4831_v22, 0.0  ;;  %v2714_v56 = vld [vmem:[%s5917_s5 + $0x20] sm:$0xff]  ;;  %v2717_v22 = vld [vmem:[%s5917_s5 + $0x38] sm:$0xff] }
 0x328   : > { %v2669_v36 = vpop.f32.mrb[47].mxu0  ;;  %v4832_v35 = vadd.f32 %v4625_v9, %v5775_v59  ;;  %v2934_v21 = vrot.slane %v2890_v14, %v5784_v18  ;;  %v2791_v60 = vrot.slane %v2753_v49, %v5784_v18  ;;  %v2798_v42 = vrot.slane %v2754_v7, %v5784_v18  ;;  %v2716_v9 = vld [vmem:[%s5917_s5 + $0x30] sm:$0xff] }
 0x329   : > { %v4833_v20 = vadd.f32 %v5775_v59, %v2669_v36  ;;  %v2927_v59 = vrot.slane %v2889_v57, %v5784_v18  ;;  %v2719_v36 = vld [vmem:[%s5917_s5 + $0x48] sm:$0xff] }
 0x32a   : > { %v2709_v0 = vmax.f32 %v4832_v35, 0.0  ;;  %v2718_v35 = vld [vmem:[%s5917_s5 + $0x40] sm:$0xff] }
 0x32b   : > { %v2708_v24 = vmax.f32 %v4833_v20, 0.0  ;;  %v2721_v20 = vld [vmem:[%s5917_s5 + $0x58] sm:$0xff] }
 0x32c   : > { %v2891_v47 = vcombine.low %v2707_v52, %v2709_v0  ;;  %v2892_v40 = vcombine.high %v2707_v52, %v2709_v0  ;;  %v2720_v52 = vld [vmem:[%s5917_s5 + $0x50] sm:$0xff]  ;;  %v2722_v0 = vld [vmem:[%s5917_s5 + $0x60] sm:$0xff] }
 0x32d   : > { %v2755_v63 = vcombine.low %v2706_v61, %v2708_v24  ;;  %v2756_v51 = vcombine.high %v2706_v61, %v2708_v24  ;;  %v2723_v61 = vld [vmem:[%s5917_s5 + $0x68] sm:$0xff]  ;;  %v2725_v24 = vld [vmem:[%s5917_s5 + $0x78] sm:$0xff] }
 0x32e   : > { %v2941_v33 = vrot.slane %v2891_v47, %v5784_v18  ;;  %v2948_v10 = vrot.slane %v2892_v40, %v5784_v18 }
 0x32f   : > { %v2805_v58 = vrot.slane %v2755_v63, %v5784_v18  ;;  %v2812_v19 = vrot.slane %v2756_v51, %v5784_v18 }
 0x330   : > { %v2953_v38 = vcombine.low %v2927_v59, %v2941_v33  ;;  %v2954_v17 = vcombine.high %v2927_v59, %v2941_v33  ;;  %v2955_v50 = vcombine.low %v2934_v21, %v2948_v10  ;;  %v2956_v31 = vcombine.high %v2934_v21, %v2948_v10 }
 0x331   : > { %v2817_v53 = vcombine.low %v2791_v60, %v2805_v58  ;;  %v2818_v29 = vcombine.high %v2791_v60, %v2805_v58  ;;  %v2819_v62 = vcombine.low %v2798_v42, %v2812_v19  ;;  %v2820_v32 = vcombine.high %v2798_v42, %v2812_v19 }
 0x332   : > { %v2991_v41 = vrot.slane %v2953_v38, %v5784_v18  ;;  %v5839_v3 = vrot.slane %v2955_v50, %v5784_v18  ;;  %v3005_v48 = vrot.slane %v2954_v17, %v5784_v18  ;;  %v3012_v4 = vrot.slane %v2956_v31, %v5784_v18 }
 0x333   : > { %v2855_v11 = vrot.slane %v2817_v53, %v5784_v18  ;;  %v2862_v55 = vrot.slane %v2819_v62, %v5784_v18  ;;  %v2869_v45 = vrot.slane %v2818_v29, %v5784_v18  ;;  %v2876_v28 = vrot.slane %v2820_v32, %v5784_v18 }
 0x334   : > { %v3017_v44 = vcombine.low %v5832_v27, %v3005_v48  ;;  %v3013_v13 = vcombine.low %v5812_v34, %v2991_v41  ;;  %v3018_v6 = vcombine.high %v5832_v27, %v3005_v48  ;;  %v3014_v30 = vcombine.high %v5812_v34, %v2991_v41  ;;  %v2724_v34 = vld [vmem:[%s5917_s5 + $0x70] sm:$0xff] }
 0x335   : > { %v2877_v16 = vcombine.low %v2827_v12, %v2855_v11  ;;  %v2881_v15 = vcombine.low %v2841_v1, %v2869_v45  ;;  %v2882_v2 = vcombine.high %v2841_v1, %v2869_v45  ;;  %v2878_v23 = vcombine.high %v2827_v12, %v2855_v11 }
 0x336   : > { %v2883_v26 = vcombine.low %v2848_v25, %v2876_v28  ;;  %v2879_v39 = vcombine.low %v5819_v43, %v2862_v55  ;;  %v2884_v18 = vcombine.high %v2848_v25, %v2876_v28  ;;  %v2880_v54 = vcombine.high %v5819_v43, %v2862_v55 }
 0x337   : > { %3101 = vmatprep.mubr.f32.mxu1 %v2881_v15  ;;  %v3019_v57 = vcombine.low %v5835_v8, %v3012_v4  ;;  %v3015_v14 = vcombine.low %v5815_v37, %v5839_v3  ;;  %v3020_v49 = vcombine.high %v5835_v8, %v3012_v4  ;;  %v3016_v7 = vcombine.high %v5815_v37, %v5839_v3  ;;  %v3815_v37 = vld [vmem:[%s5918_s6] ss:$0 sm:$0xff] }
 0x338   : > { %3102 = vmatmul.mubr.f32.vlgmr.msra.gmra.mrb[96].mxu1 %v2877_v16 }
 0x339   : > { %3108 = vmatpush1.xpose.msra.mxu1 %v2712_v46  ;;  %3171 = vmatprep.mubr.f32.mxu1 %v2882_v2 }
 0x33a   : > { %3177 = vmatprep.subr.mxu1 %v2715_v5 }
 0x340   : > { %3172 = vmatmul.mubr.f32.vlgmr.msra.gmra.mrb[96].mxu1 %v2878_v23 }
 0x341   : > { %3178 = vmatpush1.xpose.msra.mxu1 %v2714_v56  ;;  %3241 = vmatprep.mubr.f32.mxu1 %v2883_v26 }
 0x342   : > { %3247 = vmatprep.subr.mxu1 %v2717_v22 }
 0x348   : > { %3242 = vmatmul.mubr.f32.vlgmr.msra.gmra.mrb[96].mxu1 %v2879_v39 }
 0x349   : > { %3248 = vmatpush1.xpose.msra.mxu1 %v2716_v9  ;;  %3311 = vmatprep.mubr.f32.mxu1 %v2884_v18 }
 0x34a   : > { %3317 = vmatprep.subr.mxu1 %v2719_v36 }
 0x350   : > { %3312 = vmatmul.mubr.f32.vlgmr.msra.gmra.mrb[96].mxu1 %v2880_v54 }
 0x351   : > { %3318 = vmatpush1.xpose.msra.mxu1 %v2718_v35  ;;  %3381 = vmatprep.mubr.f32.mxu1 %v3017_v44 }
 0x352   : > { %3387 = vmatprep.subr.mxu1 %v2721_v20 }
 0x358   : > { %3382 = vmatmul.mubr.f32.vlgmr.msra.gmra.mrb[96].mxu1 %v3013_v13 }
 0x359   : > { %3388 = vmatpush1.xpose.msra.mxu1 %v2720_v52  ;;  %3451 = vmatprep.mubr.f32.mxu1 %v3018_v6 }
 0x35a   : > { %3457 = vmatprep.subr.mxu1 %v2723_v61 }
 0x360   : > { %3452 = vmatmul.mubr.f32.vlgmr.msra.gmra.mrb[96].mxu1 %v3014_v30 }
 0x361   : > { %3458 = vmatpush1.xpose.msra.mxu1 %v2722_v0  ;;  %3521 = vmatprep.mubr.f32.mxu1 %v3019_v57 }
 0x362   : > { %3527 = vmatprep.subr.mxu1 %v2725_v24 }
 0x368   : > { %3522 = vmatmul.mubr.f32.vlgmr.msra.gmra.mrb[96].mxu1 %v3015_v14 }
 0x369   : > { %3528 = vmatpush1.xpose.msra.mxu1 %v2724_v34  ;;  %3591 = vmatprep.mubr.f32.mxu1 %v3020_v49 }
 0x370   : > { %3592 = vmatmul.mubr.f32.vlgmr.msra.gmra.mrb[96].mxu1 %v3016_v7 }
 0x443   : > { %v3593_v12 = vpop.f32.mrb[96].mxu1 }
 0x444   : > { %v4834_v43 = vadd.f32 %v3815_v37, %v3593_v12  ;;  %v3595_v47 = vpop.f32.mrb[97].mxu1 }
 0x446   : > { %v3598_v40 = vsel %vm3597_vm1, %v4834_v43, -inf }
 0x447   : > { %3599 = vmax.xlane.f32.xlu0 %v3598_v40 }
 0x4d4   : > { %v3600_v63 = vpop.xlane.xlu0 %3599 }
 0x4d5   : > { %v3601_v51 = vsub.f32 %v4834_v43, %v3600_v63 }
 0x4d7   : > { %v3602_v59 = vmul.f32 1.442695, %v3601_v51 }
 0x4d9   : > { %4936 = vpow2.f32 %v3602_v59 }
 0x4e3   : > { %v4937_v21 = vpop.eup %4936 }
 0x4e4   : > { %v3604_v1 = vsel %vm3597_vm1, %v4937_v21, 0.0 }
 0x4e5   : > { %3605 = vadd.xlane.f32.xlu0 %v3604_v1 }
 0x572   : > { %v3606_v25 = vpop.xlane.xlu0 %3605 }
 0x573   : > { %4938 = vrcp.f32 %v3606_v25 }
 0x57d   : > { %v4939_v33 = vpop.eup %4938 }
 0x57e   : > { %v3608_v10 = vmul.f32 %v4939_v33, %v4937_v21 }
 0x580   : > { %3609 = vst.msk [vmem:[%s293_s13] sm:$0xff] %vm3597_vm1, %v3608_v10 }
 0x581 PF: > { %s18_s24 = sadd.s32 1, %s4978_s24  }
 0x582   : > { %p15_p5 = scmp.ge.s32.totalorder %s18_s24, 4  }
 0x584   :  { %17 = sbr.rel (!%p15_p5) target bundleno = 1 (0x1), region = 87 }
 0x58b   :  { %3629 = vsyncpa [#allocation4], 1 }
 0x58c   :  { %3631 = vsyncpa [#allocation4 + $0x1], 1 }

</bundles_post_ra>
